<compile_context>
chip_gen: v6e
topology: v6e:2x2x1
jax: 0.10.0
libtpu: 0.0.40
codegen_flags: <defaults>
</compile_context>

<pallas_src>
import functools

import jax
import jax.numpy as jnp
from jax.experimental import pallas as pl
from jax.experimental.pallas import tpu as pltpu


NEG_SLOPE = 0.01  # nn.LeakyReLU() default


def _leaky_relu(x):
    return jnp.where(x > 0, x, NEG_SLOPE * x)


def _vae_kernel(
    # inputs
    x_ref,      # (tb, nin)        original input dtype (e.g. f32); cast to MXU dtype in-kernel
    eps_ref,    # (tb, nz)         f32 reparameterization noise
    we1_ref,    # (nin, nh)        encoder layer 1
    wsq_ref,    # (3, nh, nh)      [we2, wd2, wx1]
    wmv1_ref,   # (nh, 2*nh)       [wm1 | wv1]
    wmv2_ref,   # (2*nh, 2*nz)     block-diag(wm2, wv2)
    wd1_ref,    # (nz, nh)         decoder layer 1
    wx2_ref,    # (nh, nin)        xmu layer 2
    bias_ref,   # (1, 7*nh + nin + 2*nz)  all biases, lane-aligned layout
    # outputs
    recon_ref,  # (tb, nin)        bf16
    lat_ref,    # (tb, nlat_pad)   f32, [mu | logvar | z | zero pad]
    *, nh, nz, nin,
):
    f32 = jnp.float32
    cdt = we1_ref.dtype  # compute (MXU input) dtype, e.g. bfloat16

    # static bias offsets inside the flat bias vector
    o_be1, o_be2 = 0, nh
    o_bd1, o_bd2 = 2 * nh, 3 * nh
    o_bx1 = 4 * nh
    o_bmv1 = 5 * nh            # width 2*nh
    o_bx2 = 7 * nh             # width nin
    o_bmv2 = 7 * nh + nin      # width 2*nz

    def bias(off, width):
        return bias_ref[:, off:off + width]  # (1, width), f32

    def dot(a, w):
        return jnp.dot(a.astype(cdt), w, preferred_element_type=f32)

    x = x_ref[...]  # original dtype; cast onto the MXU path inside dot()

    # ---- encoder: Linear -> LeakyReLU -> Linear -> LeakyReLU ----
    h = _leaky_relu(dot(x, we1_ref[...]) + bias(o_be1, nh))
    h = _leaky_relu(dot(h, wsq_ref[0]) + bias(o_be2, nh))

    # ---- fused zmu/zlogvar heads ----
    # layer 1: one (nh, 2*nh) matmul instead of two (nh, nh) matmuls
    hmv = _leaky_relu(dot(h, wmv1_ref[...]) + bias(o_bmv1, 2 * nh))
    # layer 2: block-diagonal (2*nh, 2*nz) weight -> mu|logvar contiguous
    mulv = dot(hmv, wmv2_ref[...]) + bias(o_bmv2, 2 * nz)    # (tb, 2*nz)
    mu = mulv[:, :nz]
    logvar = mulv[:, nz:]

    # ---- reparameterize: z = mu + exp(0.5*logvar) * eps (f32) ----
    z = mu + jnp.exp(0.5 * logvar) * eps_ref[...]

    # ---- decoder: Linear -> LeakyReLU -> Linear -> LeakyReLU ----
    d = _leaky_relu(dot(z, wd1_ref[...]) + bias(o_bd1, nh))
    d = _leaky_relu(dot(d, wsq_ref[1]) + bias(o_bd2, nh))

    # ---- xmu head: Linear -> LeakyReLU -> Linear -> Sigmoid ----
    hx = _leaky_relu(dot(d, wsq_ref[2]) + bias(o_bx1, nh))
    recon = jax.nn.sigmoid(dot(hx, wx2_ref[...]) + bias(o_bx2, nin))

    recon_ref[...] = recon.astype(recon_ref.dtype)

    # lane-dense latent slab [mu | logvar | z | 0-pad], written without a concatenate
    lat_ref[:, 0:2 * nz] = mulv.astype(lat_ref.dtype)
    lat_ref[:, 2 * nz:3 * nz] = z.astype(lat_ref.dtype)
    nlat_pad = lat_ref.shape[-1]
    if nlat_pad > 3 * nz:  # static Python condition (pad lanes zeroed for determinism)
        lat_ref[:, 3 * nz:] = jnp.zeros((lat_ref.shape[0], nlat_pad - 3 * nz), lat_ref.dtype)


def init_vae_params(key, nin, nz, nh, dtype=jnp.float32):
    """PyTorch-style uniform(-1/sqrt(fan_in), 1/sqrt(fan_in)) init; weights stored (in, out)."""
    def linear(key, fan_in, fan_out):
        kw, kb = jax.random.split(key)
        bound = 1.0 / jnp.sqrt(jnp.float32(fan_in))
        w = jax.random.uniform(kw, (fan_in, fan_out), dtype, -bound, bound)
        b = jax.random.uniform(kb, (1, fan_out), dtype, -bound, bound)
        return w, b

    keys = jax.random.split(key, 10)
    p = {}
    p["we1"], p["be1"] = linear(keys[0], nin, nh)   # encoder[0]
    p["we2"], p["be2"] = linear(keys[1], nh, nh)    # encoder[2]
    p["wm1"], p["bm1"] = linear(keys[2], nh, nh)    # zmu[0]
    p["wm2"], p["bm2"] = linear(keys[3], nh, nz)    # zmu[2]
    p["wv1"], p["bv1"] = linear(keys[4], nh, nh)    # zlogvar[0]
    p["wv2"], p["bv2"] = linear(keys[5], nh, nz)    # zlogvar[2]
    p["wd1"], p["bd1"] = linear(keys[6], nz, nh)    # decoder[0]
    p["wd2"], p["bd2"] = linear(keys[7], nh, nh)    # decoder[2]
    p["wx1"], p["bx1"] = linear(keys[8], nh, nh)    # xmu[0]
    p["wx2"], p["bx2"] = linear(keys[9], nh, nin)   # xmu[2]
    return p


def pack_vae_params(p, *, nin, nz, nh, compute_dtype=jnp.bfloat16):
    """Coalesce 20 per-layer tensors into 7 kernel inputs (weights in compute_dtype)."""
    # TODO(synk): for small-batch latency (B <~ 64) quantize we1/wx2 to int8 (v5e/v6e)
    # or fp8 (v7x) to halve the dominant weight HBM traffic.
    cd = compute_dtype
    wsq = jnp.stack([p["we2"], p["wd2"], p["wx1"]], axis=0).astype(cd)   # (3, nh, nh)
    wmv1 = jnp.concatenate([p["wm1"], p["wv1"]], axis=1).astype(cd)      # (nh, 2*nh)
    wmv2 = jnp.zeros((2 * nh, 2 * nz), jnp.float32)
    wmv2 = wmv2.at[:nh, :nz].set(p["wm2"]).at[nh:, nz:].set(p["wv2"])
    wmv2 = wmv2.astype(cd)                                               # (2*nh, 2*nz)
    bias = jnp.concatenate(
        [p["be1"], p["be2"], p["bd1"], p["bd2"], p["bx1"],   # 5 * nh   (128-aligned)
         p["bm1"], p["bv1"],                                 # 2 * nh
         p["bx2"],                                           # nin
         p["bm2"], p["bv2"]],                                # 2 * nz
        axis=1,
    ).astype(jnp.float32)                                    # (1, 7*nh + nin + 2*nz)
    return {
        "we1": p["we1"].astype(cd),   # (nin, nh)
        "wsq": wsq,
        "wmv1": wmv1,
        "wmv2": wmv2,
        "wd1": p["wd1"].astype(cd),   # (nz, nh)
        "wx2": p["wx2"].astype(cd),   # (nh, nin)
        "bias": bias,
    }


def _pick_batch_tile(B):
    """Batch-tile size: prefer 256 rows (good HBM pipeline efficiency), keep at
    least 2 full tiles whenever B allows it (v7x has 2 TensorCores and the grid
    is marked "parallel"), and never go below 16 rows (bf16 sublane packing).
    Batches that don't divide evenly are zero-padded by the wrapper."""
    tb = 256
    while tb > 16 and B < 2 * tb:
        tb //= 2
    return tb


@functools.partial(jax.jit, static_argnames=("nin", "nz", "nh"))
def vae_forward(x_nchw, eps, packed, *, nin, nz, nh):
    """Returns (recon, input, mu, logvar, z) like VAE.forward (z extra)."""
    B = x_nchw.shape[0]
    # nn.Flatten() only -- NO dtype cast here; the kernel casts onto the MXU path.
    x_flat = x_nchw.reshape(B, -1)
    assert x_flat.shape[1] == nin

    tb = _pick_batch_tile(B)
    nb = pl.cdiv(B, tb)
    B_pad = nb * tb
    if B_pad != B:  # zero-pad awkward batch sizes to a whole number of tiles
        x_flat = jnp.pad(x_flat, ((0, B_pad - B), (0, 0)))
        eps = jnp.pad(eps, ((0, B_pad - B), (0, 0)))

    nlat = 3 * nz
    nlat_pad = ((nlat + 127) // 128) * 128   # lane-dense latent output width

    kernel = functools.partial(_vae_kernel, nh=nh, nz=nz, nin=nin)

    def resident_spec(shape):
        # Whole-array block, constant index across the batch grid: stays
        # VMEM-resident and single-buffered (no re-DMA, no duplicate buffer).
        return pl.BlockSpec(shape, lambda i, _s=shape: tuple(0 for _ in _s),
                            pipeline_mode=pl.Buffered(1))

    weight_keys = ("we1", "wsq", "wmv1", "wmv2", "wd1", "wx2", "bias")
    in_specs = [
        pl.BlockSpec((tb, nin), lambda i: (i, 0)),   # x
        pl.BlockSpec((tb, nz), lambda i: (i, 0)),    # eps
    ] + [resident_spec(packed[k].shape) for k in weight_keys]

    out_specs = (
        pl.BlockSpec((tb, nin), lambda i: (i, 0)),        # recon (bf16)
        pl.BlockSpec((tb, nlat_pad), lambda i: (i, 0)),   # [mu | logvar | z | pad]
    )
    out_shapes = (
        jax.ShapeDtypeStruct((B_pad, nin), jnp.bfloat16),    # bf16 recon: halves output HBM bytes
        jax.ShapeDtypeStruct((B_pad, nlat_pad), jnp.float32),
    )

    # Advisory cost estimate for the XLA scheduler.
    cd = packed["we1"].dtype
    w_itemsize = jnp.dtype(cd).itemsize
    flops = 2 * B_pad * (nin * nh + nh * nh + nh * 2 * nh + 2 * nh * 2 * nz
                         + nz * nh + nh * nh + nh * nh + nh * nin)
    transcendentals = B_pad * (nz + nin)            # exp in reparam + sigmoid
    weight_elems = (nin * nh + 3 * nh * nh + nh * 2 * nh + 2 * nh * 2 * nz
                    + nz * nh + nh * nin)
    bytes_accessed = (
        B_pad * nin * jnp.dtype(x_flat.dtype).itemsize   # x (original dtype)
        + B_pad * nz * 4                                 # eps
        + weight_elems * w_itemsize                      # weights
        + (7 * nh + nin + 2 * nz) * 4                    # biases
        + B_pad * nin * 2                                # recon (bf16)
        + B_pad * nlat_pad * 4                           # latents
    )

    recon, lat = pl.pallas_call(
        kernel,
        out_shape=out_shapes,
        grid_spec=pltpu.PrefetchScalarGridSpec(
            num_scalar_prefetch=0,
            grid=(nb,),
            in_specs=in_specs,
            out_specs=out_specs,
        ),
        compiler_params=pltpu.CompilerParams(
            dimension_semantics=("parallel",),
        ),
        cost_estimate=pl.CostEstimate(
            flops=flops,
            transcendentals=transcendentals,
            bytes_accessed=bytes_accessed,
        ),
    )(x_flat, eps, *[packed[k] for k in weight_keys])

    recon = recon[:B]
    lat = lat[:B]
    mu = lat[:, :nz]
    logvar = lat[:, nz:2 * nz]
    z = lat[:, 2 * nz:3 * nz]
    return recon, x_nchw, mu, logvar, z


def _reference_forward(x_flat, eps, p, compute_dtype):
    """Pure-JAX reference with the same bf16-matmul / f32-accumulate recipe."""
    cd = compute_dtype
    f32 = jnp.float32

    def lin(a, w, b):
        return jnp.dot(a.astype(cd), w.astype(cd), preferred_element_type=f32) + b.astype(f32)

    h = _leaky_relu(lin(x_flat, p["we1"], p["be1"]))
    h = _leaky_relu(lin(h, p["we2"], p["be2"]))
    hm = _leaky_relu(lin(h, p["wm1"], p["bm1"]))
    hv = _leaky_relu(lin(h, p["wv1"], p["bv1"]))
    mu = lin(hm, p["wm2"], p["bm2"])
    logvar = lin(hv, p["wv2"], p["bv2"])
    z = mu + jnp.exp(0.5 * logvar) * eps
    d = _leaky_relu(lin(z, p["wd1"], p["bd1"]))
    d = _leaky_relu(lin(d, p["wd2"], p["bd2"]))
    hx = _leaky_relu(lin(d, p["wx1"], p["bx1"]))
    recon = jax.nn.sigmoid(lin(hx, p["wx2"], p["bx2"]))
    return recon, mu, logvar, z


if __name__ == "__main__":
    # Small shapes consistent with the module: image input flattened to nin.
    B, C, H, W = 8, 4, 16, 16
    nin = C * H * W      # 1024
    nh = 128
    nz = 32
    compute_dtype = jnp.bfloat16

    key = jax.random.PRNGKey(0)
    k_x, k_eps, k_p = jax.random.split(key, 3)

    x = jax.random.uniform(k_x, (B, C, H, W), jnp.float32)    # NCHW input
    eps = jax.random.normal(k_eps, (B, nz), jnp.float32)      # reparam noise
    params = init_vae_params(k_p, nin, nz, nh)
    packed = pack_vae_params(params, nin=nin, nz=nz, nh=nh, compute_dtype=compute_dtype)

    recon, inp, mu, logvar, z = vae_forward(x, eps, packed, nin=nin, nz=nz, nh=nh)
    jax.block_until_ready((recon, mu, logvar, z))

    # Correctness check against a pure-JAX reference of the same forward pass.
    rec_r, mu_r, lv_r, z_r = _reference_forward(x.reshape(B, -1), eps, params, compute_dtype)

    assert recon.shape == (B, nin) and mu.shape == (B, nz)
    assert logvar.shape == (B, nz) and z.shape == (B, nz)
    assert recon.dtype == jnp.bfloat16
    assert jnp.allclose(mu, mu_r, atol=2e-3, rtol=2e-3)
    assert jnp.allclose(logvar, lv_r, atol=2e-3, rtol=2e-3)
    assert jnp.allclose(z, z_r, atol=2e-3, rtol=2e-3)
    # recon is stored in bf16 (review item); compare with a bf16-appropriate tolerance.
    assert jnp.allclose(recon.astype(jnp.float32), rec_r, atol=1e-2, rtol=1e-2)

    print("KERNEL_OK")
</pallas_src>

<mosaic_0001>
module attributes {stable_mosaic.version = 11 : i64} {
  func.func @_vae_kernel(%arg0: i32, %arg1: memref<16x1024xf32, #tpu.memory_space<vmem>>, %arg2: memref<16x32xf32, #tpu.memory_space<vmem>>, %arg3: memref<1024x128xbf16, #tpu.memory_space<vmem>>, %arg4: memref<3x128x128xbf16, #tpu.memory_space<vmem>>, %arg5: memref<128x256xbf16, #tpu.memory_space<vmem>>, %arg6: memref<256x64xbf16, #tpu.memory_space<vmem>>, %arg7: memref<32x128xbf16, #tpu.memory_space<vmem>>, %arg8: memref<128x1024xbf16, #tpu.memory_space<vmem>>, %arg9: memref<1x1984xf32, #tpu.memory_space<vmem>>, %arg10: memref<16x1024xbf16, #tpu.memory_space<vmem>>, %arg11: memref<16x128xf32, #tpu.memory_space<vmem>>) attributes {dimension_semantics = [#tpu.dimension_semantics<parallel>], iteration_bounds = array<i64: 1>, scalar_prefetch = 0 : i64, scratch_operands = 0 : i64, tpu.core_type = #tpu.core_type<tc>, window_params = [{transform_indices = @transform_0, window_bounds = array<i64: 16, 1024>}, {transform_indices = @transform_1, window_bounds = array<i64: 16, 32>}, {pipeline_mode = #tpu.pipeline_mode<synchronous>, transform_indices = @transform_2, window_bounds = array<i64: 1024, 128>}, {pipeline_mode = #tpu.pipeline_mode<synchronous>, transform_indices = @transform_3, window_bounds = array<i64: 3, 128, 128>}, {pipeline_mode = #tpu.pipeline_mode<synchronous>, transform_indices = @transform_4, window_bounds = array<i64: 128, 256>}, {pipeline_mode = #tpu.pipeline_mode<synchronous>, transform_indices = @transform_5, window_bounds = array<i64: 256, 64>}, {pipeline_mode = #tpu.pipeline_mode<synchronous>, transform_indices = @transform_6, window_bounds = array<i64: 32, 128>}, {pipeline_mode = #tpu.pipeline_mode<synchronous>, transform_indices = @transform_7, window_bounds = array<i64: 128, 1024>}, {pipeline_mode = #tpu.pipeline_mode<synchronous>, transform_indices = @transform_8, window_bounds = array<i64: 1, 1984>}, {transform_indices = @transform_9, window_bounds = array<i64: 16, 1024>}, {transform_indices = @transform_10, window_bounds = array<i64: 16, 128>}]} {
    %c0 = arith.constant 0 : index
    %c0_0 = arith.constant 0 : index
    %0 = vector.load %arg1[%c0, %c0_0] : memref<16x1024xf32, #tpu.memory_space<vmem>>, vector<16x1024xf32>
    %c0_1 = arith.constant 0 : index
    %c0_2 = arith.constant 0 : index
    %1 = vector.load %arg3[%c0_1, %c0_2] : memref<1024x128xbf16, #tpu.memory_space<vmem>>, vector<1024x128xbf16>
    %2 = arith.truncf %0 : vector<16x1024xf32> to vector<16x1024xbf16>
    %cst = arith.constant dense<0.000000e+00> : vector<16x128xf32>
    %3 = tpu.matmul %2, %1, %cst {dimension_numbers = #tpu.dot_dimension_numbers<[1], [0], [0], [1], [0, 0, 1, 1], [], []>} : vector<16x1024xbf16>, vector<1024x128xbf16>, vector<16x128xf32> -> vector<16x128xf32>
    %c0_3 = arith.constant 0 : index
    %c0_4 = arith.constant 0 : index
    %4 = vector.load %arg9[%c0_3, %c0_4] : memref<1x1984xf32, #tpu.memory_space<vmem>>, vector<1x128xf32>
    %5 = vector.broadcast %4 : vector<1x128xf32> to vector<16x128xf32>
    %6 = arith.addf %3, %5 : vector<16x128xf32>
    %cst_5 = arith.constant 0.000000e+00 : f32
    %7 = vector.broadcast %cst_5 : f32 to vector<16x128xf32>
    %8 = arith.cmpf ogt, %6, %7 : vector<16x128xf32>
    %cst_6 = arith.constant 0.00999999977 : f32
    %9 = vector.broadcast %cst_6 : f32 to vector<16x128xf32>
    %10 = arith.mulf %9, %6 : vector<16x128xf32>
    %11 = arith.select %8, %6, %10 : vector<16x128xi1>, vector<16x128xf32>
    %c0_7 = arith.constant 0 : index
    %c0_8 = arith.constant 0 : index
    %c0_9 = arith.constant 0 : index
    %12 = vector.load %arg4[%c0_7, %c0_8, %c0_9] : memref<3x128x128xbf16, #tpu.memory_space<vmem>>, vector<1x128x128xbf16>
    %13 = vector.shape_cast %12 : vector<1x128x128xbf16> to vector<128x128xbf16>
    %14 = arith.truncf %11 : vector<16x128xf32> to vector<16x128xbf16>
    %cst_10 = arith.constant dense<0.000000e+00> : vector<16x128xf32>
    %15 = tpu.matmul %14, %13, %cst_10 {dimension_numbers = #tpu.dot_dimension_numbers<[1], [0], [0], [1], [0, 0, 1, 1], [], []>} : vector<16x128xbf16>, vector<128x128xbf16>, vector<16x128xf32> -> vector<16x128xf32>
    %c0_11 = arith.constant 0 : index
    %c128 = arith.constant 128 : index
    %16 = vector.load %arg9[%c0_11, %c128] : memref<1x1984xf32, #tpu.memory_space<vmem>>, vector<1x128xf32>
    %17 = vector.broadcast %16 : vector<1x128xf32> to vector<16x128xf32>
    %18 = arith.addf %15, %17 : vector<16x128xf32>
    %cst_12 = arith.constant 0.000000e+00 : f32
    %19 = vector.broadcast %cst_12 : f32 to vector<16x128xf32>
    %20 = arith.cmpf ogt, %18, %19 : vector<16x128xf32>
    %cst_13 = arith.constant 0.00999999977 : f32
    %21 = vector.broadcast %cst_13 : f32 to vector<16x128xf32>
    %22 = arith.mulf %21, %18 : vector<16x128xf32>
    %23 = arith.select %20, %18, %22 : vector<16x128xi1>, vector<16x128xf32>
    %c0_14 = arith.constant 0 : index
    %c0_15 = arith.constant 0 : index
    %24 = vector.load %arg5[%c0_14, %c0_15] : memref<128x256xbf16, #tpu.memory_space<vmem>>, vector<128x256xbf16>
    %25 = arith.truncf %23 : vector<16x128xf32> to vector<16x128xbf16>
    %cst_16 = arith.constant dense<0.000000e+00> : vector<16x256xf32>
    %26 = tpu.matmul %25, %24, %cst_16 {dimension_numbers = #tpu.dot_dimension_numbers<[1], [0], [0], [1], [0, 0, 1, 1], [], []>} : vector<16x128xbf16>, vector<128x256xbf16>, vector<16x256xf32> -> vector<16x256xf32>
    %c0_17 = arith.constant 0 : index
    %c640 = arith.constant 640 : index
    %27 = vector.load %arg9[%c0_17, %c640] : memref<1x1984xf32, #tpu.memory_space<vmem>>, vector<1x256xf32>
    %28 = vector.broadcast %27 : vector<1x256xf32> to vector<16x256xf32>
    %29 = arith.addf %26, %28 : vector<16x256xf32>
    %cst_18 = arith.constant 0.000000e+00 : f32
    %30 = vector.broadcast %cst_18 : f32 to vector<16x256xf32>
    %31 = arith.cmpf ogt, %29, %30 : vector<16x256xf32>
    %cst_19 = arith.constant 0.00999999977 : f32
    %32 = vector.broadcast %cst_19 : f32 to vector<16x256xf32>
    %33 = arith.mulf %32, %29 : vector<16x256xf32>
    %34 = arith.select %31, %29, %33 : vector<16x256xi1>, vector<16x256xf32>
    %c0_20 = arith.constant 0 : index
    %c0_21 = arith.constant 0 : index
    %35 = vector.load %arg6[%c0_20, %c0_21] : memref<256x64xbf16, #tpu.memory_space<vmem>>, vector<256x64xbf16>
    %36 = arith.truncf %34 : vector<16x256xf32> to vector<16x256xbf16>
    %cst_22 = arith.constant dense<0.000000e+00> : vector<16x64xf32>
    %37 = tpu.matmul %36, %35, %cst_22 {dimension_numbers = #tpu.dot_dimension_numbers<[1], [0], [0], [1], [0, 0, 1, 1], [], []>} : vector<16x256xbf16>, vector<256x64xbf16>, vector<16x64xf32> -> vector<16x64xf32>
    %c0_23 = arith.constant 0 : index
    %c1920 = arith.constant 1920 : index
    %38 = vector.load %arg9[%c0_23, %c1920] : memref<1x1984xf32, #tpu.memory_space<vmem>>, vector<1x64xf32>
    %39 = vector.broadcast %38 : vector<1x64xf32> to vector<16x64xf32>
    %40 = arith.addf %37, %39 : vector<16x64xf32>
    %41 = vector.extract_strided_slice %40 {offsets = [0, 0], sizes = [16, 32], strides = [1, 1]} : vector<16x64xf32> to vector<16x32xf32>
    %42 = vector.extract_strided_slice %40 {offsets = [0, 32], sizes = [16, 32], strides = [1, 1]} : vector<16x64xf32> to vector<16x32xf32>
    %cst_24 = arith.constant 5.000000e-01 : f32
    %43 = vector.broadcast %cst_24 : f32 to vector<16x32xf32>
    %44 = arith.mulf %43, %42 : vector<16x32xf32>
    %45 = math.exp %44 : vector<16x32xf32>
    %c0_25 = arith.constant 0 : index
    %c0_26 = arith.constant 0 : index
    %46 = vector.load %arg2[%c0_25, %c0_26] : memref<16x32xf32, #tpu.memory_space<vmem>>, vector<16x32xf32>
    %47 = arith.mulf %45, %46 : vector<16x32xf32>
    %48 = arith.addf %41, %47 : vector<16x32xf32>
    %c0_27 = arith.constant 0 : index
    %c0_28 = arith.constant 0 : index
    %49 = vector.load %arg7[%c0_27, %c0_28] : memref<32x128xbf16, #tpu.memory_space<vmem>>, vector<32x128xbf16>
    %50 = arith.truncf %48 : vector<16x32xf32> to vector<16x32xbf16>
    %cst_29 = arith.constant dense<0.000000e+00> : vector<16x128xf32>
    %51 = tpu.matmul %50, %49, %cst_29 {dimension_numbers = #tpu.dot_dimension_numbers<[1], [0], [0], [1], [0, 0, 1, 1], [], []>} : vector<16x32xbf16>, vector<32x128xbf16>, vector<16x128xf32> -> vector<16x128xf32>
    %c0_30 = arith.constant 0 : index
    %c256 = arith.constant 256 : index
    %52 = vector.load %arg9[%c0_30, %c256] : memref<1x1984xf32, #tpu.memory_space<vmem>>, vector<1x128xf32>
    %53 = vector.broadcast %52 : vector<1x128xf32> to vector<16x128xf32>
    %54 = arith.addf %51, %53 : vector<16x128xf32>
    %cst_31 = arith.constant 0.000000e+00 : f32
    %55 = vector.broadcast %cst_31 : f32 to vector<16x128xf32>
    %56 = arith.cmpf ogt, %54, %55 : vector<16x128xf32>
    %cst_32 = arith.constant 0.00999999977 : f32
    %57 = vector.broadcast %cst_32 : f32 to vector<16x128xf32>
    %58 = arith.mulf %57, %54 : vector<16x128xf32>
    %59 = arith.select %56, %54, %58 : vector<16x128xi1>, vector<16x128xf32>
    %c1 = arith.constant 1 : index
    %c0_33 = arith.constant 0 : index
    %c0_34 = arith.constant 0 : index
    %60 = vector.load %arg4[%c1, %c0_33, %c0_34] : memref<3x128x128xbf16, #tpu.memory_space<vmem>>, vector<1x128x128xbf16>
    %61 = vector.shape_cast %60 : vector<1x128x128xbf16> to vector<128x128xbf16>
    %62 = arith.truncf %59 : vector<16x128xf32> to vector<16x128xbf16>
    %cst_35 = arith.constant dense<0.000000e+00> : vector<16x128xf32>
    %63 = tpu.matmul %62, %61, %cst_35 {dimension_numbers = #tpu.dot_dimension_numbers<[1], [0], [0], [1], [0, 0, 1, 1], [], []>} : vector<16x128xbf16>, vector<128x128xbf16>, vector<16x128xf32> -> vector<16x128xf32>
    %c0_36 = arith.constant 0 : index
    %c384 = arith.constant 384 : index
    %64 = vector.load %arg9[%c0_36, %c384] : memref<1x1984xf32, #tpu.memory_space<vmem>>, vector<1x128xf32>
    %65 = vector.broadcast %64 : vector<1x128xf32> to vector<16x128xf32>
    %66 = arith.addf %63, %65 : vector<16x128xf32>
    %cst_37 = arith.constant 0.000000e+00 : f32
    %67 = vector.broadcast %cst_37 : f32 to vector<16x128xf32>
    %68 = arith.cmpf ogt, %66, %67 : vector<16x128xf32>
    %cst_38 = arith.constant 0.00999999977 : f32
    %69 = vector.broadcast %cst_38 : f32 to vector<16x128xf32>
    %70 = arith.mulf %69, %66 : vector<16x128xf32>
    %71 = arith.select %68, %66, %70 : vector<16x128xi1>, vector<16x128xf32>
    %c2 = arith.constant 2 : index
    %c0_39 = arith.constant 0 : index
    %c0_40 = arith.constant 0 : index
    %72 = vector.load %arg4[%c2, %c0_39, %c0_40] : memref<3x128x128xbf16, #tpu.memory_space<vmem>>, vector<1x128x128xbf16>
    %73 = vector.shape_cast %72 : vector<1x128x128xbf16> to vector<128x128xbf16>
    %74 = arith.truncf %71 : vector<16x128xf32> to vector<16x128xbf16>
    %cst_41 = arith.constant dense<0.000000e+00> : vector<16x128xf32>
    %75 = tpu.matmul %74, %73, %cst_41 {dimension_numbers = #tpu.dot_dimension_numbers<[1], [0], [0], [1], [0, 0, 1, 1], [], []>} : vector<16x128xbf16>, vector<128x128xbf16>, vector<16x128xf32> -> vector<16x128xf32>
    %c0_42 = arith.constant 0 : index
    %c512 = arith.constant 512 : index
    %76 = vector.load %arg9[%c0_42, %c512] : memref<1x1984xf32, #tpu.memory_space<vmem>>, vector<1x128xf32>
    %77 = vector.broadcast %76 : vector<1x128xf32> to vector<16x128xf32>
    %78 = arith.addf %75, %77 : vector<16x128xf32>
    %cst_43 = arith.constant 0.000000e+00 : f32
    %79 = vector.broadcast %cst_43 : f32 to vector<16x128xf32>
    %80 = arith.cmpf ogt, %78, %79 : vector<16x128xf32>
    %cst_44 = arith.constant 0.00999999977 : f32
    %81 = vector.broadcast %cst_44 : f32 to vector<16x128xf32>
    %82 = arith.mulf %81, %78 : vector<16x128xf32>
    %83 = arith.select %80, %78, %82 : vector<16x128xi1>, vector<16x128xf32>
    %c0_45 = arith.constant 0 : index
    %c0_46 = arith.constant 0 : index
    %84 = vector.load %arg8[%c0_45, %c0_46] : memref<128x1024xbf16, #tpu.memory_space<vmem>>, vector<128x1024xbf16>
    %85 = arith.truncf %83 : vector<16x128xf32> to vector<16x128xbf16>
    %cst_47 = arith.constant dense<0.000000e+00> : vector<16x1024xf32>
    %86 = tpu.matmul %85, %84, %cst_47 {dimension_numbers = #tpu.dot_dimension_numbers<[1], [0], [0], [1], [0, 0, 1, 1], [], []>} : vector<16x128xbf16>, vector<128x1024xbf16>, vector<16x1024xf32> -> vector<16x1024xf32>
    %c0_48 = arith.constant 0 : index
    %c896 = arith.constant 896 : index
    %87 = vector.load %arg9[%c0_48, %c896] : memref<1x1984xf32, #tpu.memory_space<vmem>>, vector<1x1024xf32>
    %88 = vector.broadcast %87 : vector<1x1024xf32> to vector<16x1024xf32>
    %89 = arith.addf %86, %88 : vector<16x1024xf32>
    %90 = arith.negf %89 : vector<16x1024xf32>
    %91 = math.exp %90 : vector<16x1024xf32>
    %cst_49 = arith.constant 1.000000e+00 : f32
    %92 = vector.broadcast %cst_49 : f32 to vector<16x1024xf32>
    %93 = arith.addf %92, %91 : vector<16x1024xf32>
    %94 = arith.divf %92, %93 : vector<16x1024xf32>
    %95 = arith.truncf %94 : vector<16x1024xf32> to vector<16x1024xbf16>
    %c0_50 = arith.constant 0 : index
    %c0_51 = arith.constant 0 : index
    %96 = vector.load %arg10[%c0_50, %c0_51] : memref<16x1024xbf16, #tpu.memory_space<vmem>>, vector<16x1024xbf16>
    tpu.vector_store %arg10[%c0_50, %c0_51], %95 {strides = array<i32>} : memref<16x1024xbf16, #tpu.memory_space<vmem>>, vector<16x1024xbf16>,
    %c0_52 = arith.constant 0 : index
    %c0_53 = arith.constant 0 : index
    %97 = vector.load %arg11[%c0_52, %c0_53] : memref<16x128xf32, #tpu.memory_space<vmem>>, vector<16x64xf32>
    tpu.vector_store %arg11[%c0_52, %c0_53], %40 {strides = array<i32>} : memref<16x128xf32, #tpu.memory_space<vmem>>, vector<16x64xf32>,
    %c0_54 = arith.constant 0 : index
    %c64 = arith.constant 64 : index
    %98 = vector.load %arg11[%c0_54, %c64] : memref<16x128xf32, #tpu.memory_space<vmem>>, vector<16x32xf32>
    tpu.vector_store %arg11[%c0_54, %c64], %48 {strides = array<i32>} : memref<16x128xf32, #tpu.memory_space<vmem>>, vector<16x32xf32>,
    %cst_55 = arith.constant 0.000000e+00 : f32
    %99 = vector.broadcast %cst_55 : f32 to vector<16x32xf32>
    %c0_56 = arith.constant 0 : index
    %c96 = arith.constant 96 : index
    %100 = vector.load %arg11[%c0_56, %c96] : memref<16x128xf32, #tpu.memory_space<vmem>>, vector<16x32xf32>
    tpu.vector_store %arg11[%c0_56, %c96], %99 {strides = array<i32>} : memref<16x128xf32, #tpu.memory_space<vmem>>, vector<16x32xf32>,
    return
  }
  func.func @transform_0(%arg0: i32) -> (i32, i32) {
    %c0_i32 = arith.constant 0 : i32
    %c0_i32_0 = arith.constant 0 : i32
    return %arg0, %c0_i32 : i32, i32
  }
  func.func @transform_1(%arg0: i32) -> (i32, i32) {
    %c0_i32 = arith.constant 0 : i32
    %c0_i32_0 = arith.constant 0 : i32
    return %arg0, %c0_i32 : i32, i32
  }
  func.func @transform_2(%arg0: i32) -> (i32, i32) {
    %c0_i32 = arith.constant 0 : i32
    %c0_i32_0 = arith.constant 0 : i32
    %c0_i32_1 = arith.constant 0 : i32
    return %c0_i32, %c0_i32_0 : i32, i32
  }
  func.func @transform_3(%arg0: i32) -> (i32, i32, i32) {
    %c0_i32 = arith.constant 0 : i32
    %c0_i32_0 = arith.constant 0 : i32
    %c0_i32_1 = arith.constant 0 : i32
    %c0_i32_2 = arith.constant 0 : i32
    return %c0_i32, %c0_i32_0, %c0_i32_1 : i32, i32, i32
  }
  func.func @transform_4(%arg0: i32) -> (i32, i32) {
    %c0_i32 = arith.constant 0 : i32
    %c0_i32_0 = arith.constant 0 : i32
    %c0_i32_1 = arith.constant 0 : i32
    return %c0_i32, %c0_i32_0 : i32, i32
  }
  func.func @transform_5(%arg0: i32) -> (i32, i32) {
    %c0_i32 = arith.constant 0 : i32
    %c0_i32_0 = arith.constant 0 : i32
    %c0_i32_1 = arith.constant 0 : i32
    return %c0_i32, %c0_i32_0 : i32, i32
  }
  func.func @transform_6(%arg0: i32) -> (i32, i32) {
    %c0_i32 = arith.constant 0 : i32
    %c0_i32_0 = arith.constant 0 : i32
    %c0_i32_1 = arith.constant 0 : i32
    return %c0_i32, %c0_i32_0 : i32, i32
  }
  func.func @transform_7(%arg0: i32) -> (i32, i32) {
    %c0_i32 = arith.constant 0 : i32
    %c0_i32_0 = arith.constant 0 : i32
    %c0_i32_1 = arith.constant 0 : i32
    return %c0_i32, %c0_i32_0 : i32, i32
  }
  func.func @transform_8(%arg0: i32) -> (i32, i32) {
    %c0_i32 = arith.constant 0 : i32
    %c0_i32_0 = arith.constant 0 : i32
    %c0_i32_1 = arith.constant 0 : i32
    return %c0_i32, %c0_i32_0 : i32, i32
  }
  func.func @transform_9(%arg0: i32) -> (i32, i32) {
    %c0_i32 = arith.constant 0 : i32
    %c0_i32_0 = arith.constant 0 : i32
    return %arg0, %c0_i32 : i32, i32
  }
  func.func @transform_10(%arg0: i32) -> (i32, i32) {
    %c0_i32 = arith.constant 0 : i32
    %c0_i32_0 = arith.constant 0 : i32
    return %arg0, %c0_i32 : i32, i32
  }
}

</mosaic_0001>

<bundles_post_ra>
// kernel: vae_forward.1
= control target key start
LH: loop header
LB: loop body
LE: loop exit
PB: predicated region body
PF: predicated region fallthrough
CT: control target
= control target key end

     0   :  { %16 = vsyncpa [#allocation3], 0  ;;  %s3036_s13 = smov [#allocation2]   ;;  %s3666_s0 = inlined_call_operand.vmem [shape: f32[16,1024], index: 0, kind: input, shape index: {}]   ;;  %s3667_s1 = inlined_call_operand.vmem [shape: f32[16,32], index: 1, kind: input, shape index: {}]   ;;  %s3668_s2 = inlined_call_operand.vmem [shape: bf16[1024,128], index: 2, kind: input, shape index: {}]   ;;  %s3669_s3 = inlined_call_operand.vmem [shape: bf16[3,128,128], index: 3, kind: input, shape index: {}]   ;;  %s3670_s4 = inlined_call_operand.vmem [shape: bf16[128,256], index: 4, kind: input, shape index: {}]   ;;  %s3671_s5 = inlined_call_operand.vmem [shape: bf16[256,64], index: 5, kind: input, shape index: {}]   ;;  %s3672_s6 = inlined_call_operand.vmem [shape: bf16[32,128], index: 6, kind: input, shape index: {}]   ;;  %s3673_s7 = inlined_call_operand.hbm [shape: bf16[128,1024], index: 7, kind: input, shape index: {}]   ;;  %s3674_s8 = inlined_call_operand.vmem [shape: f32[1,1984], index: 8, kind: input, shape index: {}]   ;;  %s3675_s9 = inlined_call_operand.vmem [shape: bf16[16,1024], index: 9, kind: output, shape index: {0}]   ;;  %s3676_s10 = inlined_call_operand.vmem [shape: f32[16,128], index: 10, kind: output, shape index: {1}]  }
   0x1   :  { %s36_s14 = sshll.u32 %s3036_s13, 4  ;;  %s37_s14 = int_to_ptr.vmem [resolvable:$true] %s36_s14 }
   0x2   :  { %s3022_s15 = scalar_lea.vmem %s37_s14, 8192  ;;  %p3027_p1 = scmp.lt.s32.totalorder %s37_s14, %s37_s14 }
   0x3   :  { %p3023_p0 = scmp.ne.s32.totalorder %s37_s14, %s3022_s15  ;;  %p3028_p2 = scmp.lt.s32.totalorder %s3022_s15, %s3022_s15 }
   0x5   :  { %p3029_p3 = por %p3028_p2, %p3027_p1 }
   0x7   :  { %p3030_p4 = pnand %p3029_p3, %p3023_p0 }
   0x9   :  { %3033 = shalt.err (!%p3030_p4)
}
   0xa   :  { %s3037_s16 = smov 512   ;;  %s3038_s17 = smov 32  }
   0xb   :  { %42 = dma.hbm_to_vmem [thread:$0]  %s3673_s7, 8192, %s37_s14, [#allocation3], %s3037_s16, %s3037_s16, %s3038_s17  }
   0xc   :  { %3034 = dma.done.wait [#allocation3], 8192  }
   0xd   :  { %3035 = vsyncadd [#allocation3], 4294959104  ;;  %v2816_v0 = vld [vmem:[%s3668_s2 + $0x78] sm:$0xff]   ;;  %v2820_v4 = vld [vmem:[%s3668_s2 + $0x70] sm:$0xff]   ;;  %vm3040_vm0 = vmmov 0   ;;  %vm2317_vm9 = vcmask 523264  }
   0xe   :  { %v2817_v1 = vld [vmem:[%s3668_s2 + $0xf8] sm:$0xff]   ;;  %2600 = vmatprep.subr.bf16.mxu0 %v2816_v0  ;;  %v2821_v5 = vld [vmem:[%s3668_s2 + $0xf0] sm:$0xff]   ;;  %v2824_v8 = vld [vmem:[%s3668_s2 + $0x68] sm:$0xff]   ;;  %s3042_s25 = smov 96   ;;  %s3043_s26 = smov 64   ;;  %vm1275_vm10 = vcmask 261120  }
   0xf   :  { %v2818_v2 = vld [vmem:[%s3668_s2 + $0x38] sm:$0xff]   ;;  %2622 = vmatprep.subr.bf16.mxu1 %v2817_v1  ;;  %v2822_v6 = vld [vmem:[%s3668_s2 + $0x30] sm:$0xff]   ;;  %v2825_v9 = vld [vmem:[%s3668_s2 + $0xe8] sm:$0xff]   ;;  %vm2328_vm11 = vcmask 785920   ;;  %vm2331_vm12 = vcmask 1048320  }
  0x10   :  { %v2819_v3 = vld [vmem:[%s3668_s2 + $0xb8] sm:$0xff]   ;;  %2601 = vmatpush3.bf16.msra.mxu0 %v2818_v2  ;;  %v2823_v7 = vld [vmem:[%s3668_s2 + $0xb0] sm:$0xff]   ;;  %v2826_v10 = vld [vmem:[%s3668_s2 + $0x28] sm:$0xff]  }
  0x11   :  { %2623 = vmatpush3.bf16.msra.mxu1 %v2819_v3  ;;  %2602 = vmatprep.subr.bf16.mxu0 %v2820_v4  ;;  %v2827_v11 = vld [vmem:[%s3668_s2 + $0xa8] sm:$0xff]   ;;  %v2828_v12 = vld [vmem:[%s3668_s2 + $0x60] sm:$0xff]   ;;  %v2832_v16 = vld [vmem:[%s3668_s2 + $0x58] sm:$0xff]  }
  0x12   :  { %2624 = vmatprep.subr.bf16.mxu1 %v2821_v5  ;;  %v2829_v13 = vld [vmem:[%s3668_s2 + $0xe0] sm:$0xff]   ;;  %v2833_v17 = vld [vmem:[%s3668_s2 + $0xd8] sm:$0xff]   ;;  %v2836_v20 = vld [vmem:[%s3668_s2 + $0x50] sm:$0xff]  }
  0x13   :  { %v2830_v14 = vld [vmem:[%s3668_s2 + $0x20] sm:$0xff]   ;;  %v2834_v18 = vld [vmem:[%s3668_s2 + $0x18] sm:$0xff]   ;;  %v2837_v21 = vld [vmem:[%s3668_s2 + $0xd0] sm:$0xff]  }
  0x14   :  { %2603 = vmatpush3.bf16.msra.mxu0 %v2822_v6  ;;  %v2831_v15 = vld [vmem:[%s3668_s2 + $0xa0] sm:$0xff]   ;;  %v2835_v19 = vld [vmem:[%s3668_s2 + $0x98] sm:$0xff]   ;;  %v2838_v22 = vld [vmem:[%s3668_s2 + $0x10] sm:$0xff]  }
  0x15   :  { %2625 = vmatpush3.bf16.msra.mxu1 %v2823_v7  ;;  %2604 = vmatprep.subr.bf16.mxu0 %v2824_v8  ;;  %v2839_v23 = vld [vmem:[%s3668_s2 + $0x90] sm:$0xff]   ;;  %v2840_v24 = vld [vmem:[%s3668_s2 + $0x48] sm:$0xff]   ;;  %v2844_v28 = vld [vmem:[%s3668_s2 + $0x40] sm:$0xff]  }
  0x16   :  { %2626 = vmatprep.subr.bf16.mxu1 %v2825_v9  ;;  %v2841_v25 = vld [vmem:[%s3668_s2 + $0xc8] sm:$0xff]   ;;  %v2845_v29 = vld [vmem:[%s3668_s2 + $0xc0] sm:$0xff]   ;;  %v52_v34 = vld [vmem:[%s3666_s0 + $0x18] sm:$0xff] }
  0x17   :  { %v2842_v26 = vld [vmem:[%s3668_s2 + $0x8] sm:$0xff]   ;;  %v2846_v30 = vld [vmem:[%s3668_s2] sm:$0xff]   ;;  %v60_v36 = vld [vmem:[%s3666_s0 + $0x58] sm:$0xff] }
  0x18   :  { %2605 = vmatpush3.bf16.msra.mxu0 %v2826_v10  ;;  %v2843_v27 = vld [vmem:[%s3668_s2 + $0x88] sm:$0xff]   ;;  %v2847_v31 = vld [vmem:[%s3668_s2 + $0x80] sm:$0xff]   ;;  %v196_v39 = vpack.c.bf16 %v60_v36, %v52_v34  ;;  %v51_v41 = vld [vmem:[%s3666_s0 + $0x10] sm:$0xff] }
  0x19   :  { %2627 = vmatpush3.bf16.msra.mxu1 %v2827_v11  ;;  %2606 = vmatprep.subr.bf16.mxu0 %v2828_v12  ;;  %v50_v32 = vld [vmem:[%s3666_s0 + $0x8] sm:$0xff]  ;;  %v49_v37 = vld [vmem:[%s3666_s0] sm:$0xff]  ;;  %v59_v42 = vld [vmem:[%s3666_s0 + $0x50] sm:$0xff] }
  0x1a   :  { %2628 = vmatprep.subr.bf16.mxu1 %v2829_v13  ;;  %v58_v33 = vld [vmem:[%s3666_s0 + $0x48] sm:$0xff]  ;;  %v57_v38 = vld [vmem:[%s3666_s0 + $0x40] sm:$0xff]  ;;  %v195_v43 = vpack.c.bf16 %v59_v42, %v51_v41  ;;  %v2848_v44 = vld [vmem:[%s3668_s2 + $0x178] sm:$0xff]   ;;  %665 = vmatprep.mubr.bf16.mxu1 %v196_v39 }
  0x1b   :  { %v194_v35 = vpack.c.bf16 %v58_v33, %v50_v32  ;;  %v193_v40 = vpack.c.bf16 %v57_v38, %v49_v37  ;;  %v2849_v45 = vld [vmem:[%s3668_s2 + $0x1f8] sm:$0xff]   ;;  %v2852_v48 = vld [vmem:[%s3668_s2 + $0x170] sm:$0xff]   ;;  %v2856_v52 = vld [vmem:[%s3668_s2 + $0x168] sm:$0xff]  }
  0x1c   :  { %2607 = vmatpush3.bf16.msra.mxu0 %v2830_v14  ;;  %v2850_v46 = vld [vmem:[%s3668_s2 + $0x138] sm:$0xff]   ;;  %v2853_v49 = vld [vmem:[%s3668_s2 + $0x1f0] sm:$0xff]   ;;  %v2857_v53 = vld [vmem:[%s3668_s2 + $0x1e8] sm:$0xff]  }
  0x1d   :  { %2629 = vmatpush3.bf16.msra.mxu1 %v2831_v15  ;;  %2608 = vmatprep.subr.bf16.mxu0 %v2832_v16  ;;  %v2851_v47 = vld [vmem:[%s3668_s2 + $0x1b8] sm:$0xff]   ;;  %v2854_v50 = vld [vmem:[%s3668_s2 + $0x130] sm:$0xff]   ;;  %v2858_v54 = vld [vmem:[%s3668_s2 + $0x128] sm:$0xff]  }
  0x1e   :  { %2630 = vmatprep.subr.bf16.mxu1 %v2833_v17  ;;  %624 = vmatprep.mubr.bf16.mxu0 %v194_v35  ;;  %v2855_v51 = vld [vmem:[%s3668_s2 + $0x1b0] sm:$0xff]   ;;  %v2859_v55 = vld [vmem:[%s3668_s2 + $0x1a8] sm:$0xff]   ;;  %v2860_v56 = vld [vmem:[%s3668_s2 + $0x160] sm:$0xff]  }
  0x1f   :  { %v2861_v57 = vld [vmem:[%s3668_s2 + $0x1e0] sm:$0xff]   ;;  %v2864_v60 = vld [vmem:[%s3668_s2 + $0x158] sm:$0xff]   ;;  %v2868_v0 = vld [vmem:[%s3668_s2 + $0x150] sm:$0xff]  }
  0x20   :  { %2609 = vmatpush3.bf16.msra.mxu0 %v2834_v18  ;;  %v2862_v58 = vld [vmem:[%s3668_s2 + $0x120] sm:$0xff]   ;;  %v2865_v61 = vld [vmem:[%s3668_s2 + $0x1d8] sm:$0xff]   ;;  %v2869_v1 = vld [vmem:[%s3668_s2 + $0x1d0] sm:$0xff]  }
  0x21   :  { %2631 = vmatpush3.bf16.msra.mxu1 %v2835_v19  ;;  %2610 = vmatprep.subr.bf16.mxu0 %v2836_v20  ;;  %v2863_v59 = vld [vmem:[%s3668_s2 + $0x1a0] sm:$0xff]   ;;  %v2866_v62 = vld [vmem:[%s3668_s2 + $0x118] sm:$0xff]   ;;  %v2870_v2 = vld [vmem:[%s3668_s2 + $0x110] sm:$0xff]  }
  0x22   :  { %2632 = vmatprep.subr.bf16.mxu1 %v2837_v21  ;;  %v2867_v63 = vld [vmem:[%s3668_s2 + $0x198] sm:$0xff]   ;;  %v2871_v3 = vld [vmem:[%s3668_s2 + $0x190] sm:$0xff]   ;;  %v2872_v4 = vld [vmem:[%s3668_s2 + $0x148] sm:$0xff]  }
  0x23   :  { %v2873_v5 = vld [vmem:[%s3668_s2 + $0x1c8] sm:$0xff]   ;;  %v2876_v8 = vld [vmem:[%s3668_s2 + $0x140] sm:$0xff]   ;;  %v56_v14 = vld [vmem:[%s3666_s0 + $0x38] sm:$0xff] }
  0x24   :  { %2611 = vmatpush3.bf16.msra.mxu0 %v2838_v22  ;;  %v2874_v6 = vld [vmem:[%s3668_s2 + $0x108] sm:$0xff]   ;;  %v2877_v9 = vld [vmem:[%s3668_s2 + $0x1c0] sm:$0xff]   ;;  %v64_v15 = vld [vmem:[%s3666_s0 + $0x78] sm:$0xff] }
  0x25   :  { %2633 = vmatpush3.bf16.msra.mxu1 %v2839_v23  ;;  %2612 = vmatprep.subr.bf16.mxu0 %v2840_v24  ;;  %v2875_v7 = vld [vmem:[%s3668_s2 + $0x188] sm:$0xff]   ;;  %v2878_v10 = vld [vmem:[%s3668_s2 + $0x100] sm:$0xff]   ;;  %v200_v17 = vpack.c.bf16 %v64_v15, %v56_v14  ;;  %v55_v20 = vld [vmem:[%s3666_s0 + $0x30] sm:$0xff] }
  0x26   :  { %2634 = vmatprep.subr.bf16.mxu1 %v2841_v25  ;;  %v2879_v11 = vld [vmem:[%s3668_s2 + $0x180] sm:$0xff]   ;;  %v54_v12 = vld [vmem:[%s3666_s0 + $0x28] sm:$0xff]  ;;  %v63_v22 = vld [vmem:[%s3666_s0 + $0x70] sm:$0xff]  ;;  %v3039_v25 = vmov 0.0  }
  0x27   :  { %v62_v13 = vld [vmem:[%s3666_s0 + $0x68] sm:$0xff]  ;;  %v53_v18 = vld [vmem:[%s3666_s0 + $0x20] sm:$0xff]  ;;  %v199_v23 = vpack.c.bf16 %v63_v22, %v55_v20  ;;  %v2880_v24 = vld [vmem:[%s3669_s3 + $0x38] sm:$0xff]  }
  0x28   :  { %2613 = vmatpush3.bf16.msra.mxu0 %v2842_v26  ;;  %v198_v16 = vpack.c.bf16 %v62_v13, %v54_v12  ;;  %v61_v19 = vld [vmem:[%s3666_s0 + $0x60] sm:$0xff]  ;;  %v2881_v26 = vld [vmem:[%s3669_s3 + $0x30] sm:$0xff]  }
  0x29   :  { %2635 = vmatpush3.bf16.msra.mxu1 %v2843_v27  ;;  %2614 = vmatprep.subr.bf16.mxu0 %v2844_v28  ;;  %v197_v21 = vpack.c.bf16 %v61_v19, %v53_v18  ;;  %v2882_v27 = vld [vmem:[%s3669_s3 + $0x28] sm:$0xff]   ;;  %v2883_v28 = vld [vmem:[%s3669_s3 + $0x20] sm:$0xff]   ;;  %v2888_v33 = vld [vmem:[%s3670_s4 + $0x70] ss:$8 sps:$4 sm:$0xff]  }
  0x2a   :  { %2636 = vmatprep.subr.bf16.mxu1 %v2845_v29  ;;  %v2884_v29 = vld [vmem:[%s3669_s3 + $0x18] sm:$0xff]   ;;  %v2887_v32 = vld [vmem:[%s3669_s3] sm:$0xff]  }
  0x2b   :  { %v2890_v34 = vld [vmem:[%s3670_s4 + $0x74] ss:$8 sps:$4 sm:$0xff]   ;;  %v2893_v35 = vld [vmem:[%s3670_s4 + $0x64] ss:$8 sps:$4 sm:$0xff]   ;;  %v2891_v36 = vld [vmem:[%s3670_s4 + $0x60] ss:$8 sps:$4 sm:$0xff]  }
  0x2c   :  { %2615 = vmatpush3.bf16.msra.mxu0 %v2846_v30  ;;  %v2885_v30 = vld [vmem:[%s3669_s3 + $0x10] sm:$0xff]   ;;  %v2899_v39 = vld [vmem:[%s3670_s4 + $0x44] ss:$8 sps:$4 sm:$0xff]   ;;  %v2903_v18 = vld [vmem:[%s3670_s4 + $0x20] ss:$8 sps:$4 sm:$0xff]  }
  0x2d   :  { %2637 = vmatpush3.bf16.msra.mxu1 %v2847_v31  ;;  %2644 = vmatprep.subr.bf16.mxu0 %v2848_v44  ;;  %v2886_v31 = vld [vmem:[%s3669_s3 + $0x8] sm:$0xff]   ;;  %v2896_v37 = vld [vmem:[%s3670_s4 + $0x54] ss:$8 sps:$4 sm:$0xff]   ;;  %v2894_v38 = vld [vmem:[%s3670_s4 + $0x50] ss:$8 sps:$4 sm:$0xff]  }
  0x2e   :  { %2666 = vmatprep.subr.bf16.mxu1 %v2849_v45  ;;  %v2902_v41 = vld [vmem:[%s3670_s4 + $0x34] ss:$8 sps:$4 sm:$0xff]   ;;  %v2900_v42 = vld [vmem:[%s3670_s4 + $0x30] ss:$8 sps:$4 sm:$0xff]   ;;  %v2909_v22 = vld [vmem:[%s3670_s4] ss:$8 sps:$4 sm:$0xff]  }
  0x2f   :  { %625 = vmatmul.mubr.bf16.vlgmr.msra.gmra.mxu0 %v193_v40  ;;  %v2897_v40 = vld [vmem:[%s3670_s4 + $0x40] ss:$8 sps:$4 sm:$0xff]   ;;  %v2908_v19 = vld [vmem:[%s3670_s4 + $0x14] ss:$8 sps:$4 sm:$0xff]   ;;  %v2906_v20 = vld [vmem:[%s3670_s4 + $0x10] ss:$8 sps:$4 sm:$0xff]  }
  0x30   :  { %666 = vmatmul.mubr.bf16.vlgmr.msra.gmra.mxu1 %v195_v43  ;;  %2645 = vmatpush3.bf16.msra.mxu0 %v2850_v46 }
  0x31   :  { %2667 = vmatpush3.bf16.msra.mxu1 %v2851_v47  ;;  %2646 = vmatprep.subr.bf16.mxu0 %v2852_v48 }
  0x32   :  { %2668 = vmatprep.subr.bf16.mxu1 %v2853_v49  ;;  %706 = vmatprep.mubr.bf16.mxu0 %v198_v16 }
  0x33   :  { %747 = vmatprep.mubr.bf16.mxu1 %v200_v17  ;;  %v2905_v17 = vld [vmem:[%s3670_s4 + $0x24] ss:$8 sps:$4 sm:$0xff]  }
  0x34   :  { %2647 = vmatpush3.bf16.msra.mxu0 %v2854_v50  ;;  %v2343_v50 = vld [vmem:[%s3674_s8] ss:$0 sm:$0xff] }
  0x35   :  { %2669 = vmatpush3.bf16.msra.mxu1 %v2855_v51  ;;  %2648 = vmatprep.subr.bf16.mxu0 %v2856_v52 }
  0x36   :  { %2670 = vmatprep.subr.bf16.mxu1 %v2857_v53 }
  0x38   :  { %2649 = vmatpush3.bf16.msra.mxu0 %v2858_v54 }
  0x39   :  { %2671 = vmatpush3.bf16.msra.mxu1 %v2859_v55  ;;  %2650 = vmatprep.subr.bf16.mxu0 %v2860_v56 }
  0x3a   :  { %2672 = vmatprep.subr.bf16.mxu1 %v2861_v57 }
  0x3c   :  { %2651 = vmatpush3.bf16.msra.mxu0 %v2862_v58 }
  0x3d   :  { %2673 = vmatpush3.bf16.msra.mxu1 %v2863_v59  ;;  %2652 = vmatprep.subr.bf16.mxu0 %v2864_v60 }
  0x3e   :  { %2674 = vmatprep.subr.bf16.mxu1 %v2865_v61 }
  0x40   :  { %2653 = vmatpush3.bf16.msra.mxu0 %v2866_v62 }
  0x41   :  { %2675 = vmatpush3.bf16.msra.mxu1 %v2867_v63  ;;  %2654 = vmatprep.subr.bf16.mxu0 %v2868_v0 }
  0x42   :  { %2676 = vmatprep.subr.bf16.mxu1 %v2869_v1 }
  0x44   :  { %2655 = vmatpush3.bf16.msra.mxu0 %v2870_v2 }
  0x45   :  { %2677 = vmatpush3.bf16.msra.mxu1 %v2871_v3  ;;  %2656 = vmatprep.subr.bf16.mxu0 %v2872_v4 }
  0x46   :  { %2678 = vmatprep.subr.bf16.mxu1 %v2873_v5 }
  0x48   :  { %2657 = vmatpush3.bf16.msra.mxu0 %v2874_v6 }
  0x49   :  { %2679 = vmatpush3.bf16.msra.mxu1 %v2875_v7  ;;  %2658 = vmatprep.subr.bf16.mxu0 %v2876_v8 }
  0x4a   :  { %2680 = vmatprep.subr.bf16.mxu1 %v2877_v9 }
  0x4c   :  { %2659 = vmatpush3.bf16.msra.mxu0 %v2878_v10 }
  0x4d   :  { %2681 = vmatpush3.bf16.msra.mxu1 %v2879_v11  ;;  %2740 = vmatprep.subr.bf16.mxu0 %v3039_v25 }
  0x4e   :  { %990 = vmatprep.subr.bf16.mxu1 %v2890_v34  ;;  %v2408_v34 = vld [vmem:[%s3674_s8 + $0x1] ss:$0 sm:$0xff] }
  0x4f   :  { %707 = vmatmul.mubr.bf16.vlgmr.msra.gmra.mxu0 %v197_v21  ;;  %v2911_v21 = vld [vmem:[%s3670_s4 + $0x4] ss:$8 sps:$4 sm:$0xff]  }
  0x50   :  { %748 = vmatmul.mubr.bf16.vlgmr.msra.gmra.mxu1 %v199_v23  ;;  %2741 = vmatpush3.bf16.msra.mxu0 %v2880_v24  ;;  %v3041_v23 = vmov 0   ;;  %v2912_v24 = vld [vmem:[%s3671_s5 + $0x78] sm:$0xff]  }
  0x51   :  { %2742 = vmatprep.subr.bf16.mxu0 %v3039_v25  ;;  %2756 = vmatprep.mubr.msk.bf16.mxu0 %vm3040_vm0, %v3039_v25 }
  0x52   :  { %991 = vmatpush1.bf16.msra.mxu1 %v2888_v33  ;;  %1022 = vmatprep.mubr.bf16.mxu1 %v3041_v23  ;;  %v2920_v33 = vld [vmem:[%s3671_s5 + $0x58] sm:$0xff]  }
  0x53   :  { %992 = vmatprep.subr.bf16.mxu1 %v2893_v35 }
  0x54   :  { %2743 = vmatpush3.bf16.msra.mxu0 %v2881_v26  ;;  %v2913_v26 = vld [vmem:[%s3671_s5 + $0x38] sm:$0xff]  }
  0x55   :  { %2744 = vmatprep.subr.bf16.mxu0 %v3039_v25 }
  0x56   :  { %993 = vmatpush1.bf16.msra.mxu1 %v2891_v36 }
  0x57   :  { %994 = vmatprep.subr.bf16.mxu1 %v2896_v37 }
  0x58   :  { %2745 = vmatpush3.bf16.msra.mxu0 %v2882_v27  ;;  %v2914_v27 = vld [vmem:[%s3671_s5 + $0x70] sm:$0xff]  }
  0x59   :  { %2746 = vmatprep.subr.bf16.mxu0 %v3039_v25 }
  0x5a   :  { %995 = vmatpush1.bf16.msra.mxu1 %v2894_v38 }
  0x5b   :  { %996 = vmatprep.subr.bf16.mxu1 %v2899_v39 }
  0x5c   :  { %2747 = vmatpush3.bf16.msra.mxu0 %v2883_v28  ;;  %v2915_v28 = vld [vmem:[%s3671_s5 + $0x30] sm:$0xff]  }
  0x5d   :  { %2748 = vmatprep.subr.bf16.mxu0 %v3039_v25 }
  0x5e   :  { %997 = vmatpush1.bf16.msra.mxu1 %v2897_v40 }
  0x5f   :  { %998 = vmatprep.subr.bf16.mxu1 %v2902_v41 }
  0x60   :  { %2749 = vmatpush3.bf16.msra.mxu0 %v2884_v29  ;;  %v2916_v29 = vld [vmem:[%s3671_s5 + $0x68] sm:$0xff]  }
  0x61   :  { %2750 = vmatprep.subr.bf16.mxu0 %v3039_v25 }
  0x62   :  { %999 = vmatpush1.bf16.msra.mxu1 %v2900_v42 }
  0x63   :  { %1000 = vmatprep.subr.bf16.mxu1 %v2905_v17  ;;  %v2433_v17 = vld [vmem:[%s3674_s8 + $0xf] ss:$0 sm:$0xff] }
  0x64   :  { %2751 = vmatpush3.bf16.msra.mxu0 %v2885_v30  ;;  %v2917_v30 = vld [vmem:[%s3671_s5 + $0x28] sm:$0xff]  }
  0x65   :  { %2752 = vmatprep.subr.bf16.mxu0 %v3039_v25 }
  0x66   :  { %1001 = vmatpush1.bf16.msra.mxu1 %v2903_v18 }
  0x67   :  { %1002 = vmatprep.subr.bf16.mxu1 %v2908_v19 }
  0x68   :  { %2753 = vmatpush3.bf16.msra.mxu0 %v2886_v31  ;;  %v2918_v31 = vld [vmem:[%s3671_s5 + $0x60] sm:$0xff]  }
  0x69   :  { %2754 = vmatprep.subr.bf16.mxu0 %v3039_v25 }
  0x6a   :  { %1003 = vmatpush1.bf16.msra.mxu1 %v2906_v20 }
  0x6b   :  { %1004 = vmatprep.subr.bf16.mxu1 %v2911_v21 }
  0x6c   :  { %2755 = vmatpush3.bf16.msra.mxu0 %v2887_v32  ;;  %v2919_v32 = vld [vmem:[%s3671_s5 + $0x20] sm:$0xff]  }
  0x6d   :  { %2697 = vmatprep.subr.bf16.mxu0 %v2912_v24 }
  0x6e   :  { %1005 = vmatpush1.bf16.msra.mxu1 %v2909_v22 }
  0x6f   :  { %2760 = vmatprep.subr.bf16.mxu1 %v3039_v25 }
  0xef   :  { %v2616_v43 = vpop.f32.mrf.mxu0 }
  0xf0   :  { %v2638_v44 = vpop.f32.mrf.mxu1 }
  0xf1   :  { %v2617_v45 = vpop.f32.mrf.mxu0 }
  0xf2   :  { %v2639_v46 = vpop.f32.mrf.mxu1  ;;  %v2618_v48 = vadd.f32 %v2617_v45, %v2616_v43 }
  0xf3   :  { %v2619_v47 = vpop.f32.mrf.mxu0  ;;  %v2640_v53 = vadd.f32 %v2639_v46, %v2638_v44  ;;  %v2921_v46 = vld [vmem:[%s3671_s5 + $0x18] sm:$0xff]  }
  0xf4   :  { %v2641_v49 = vpop.f32.mrf.mxu1  ;;  %v627_v52 = vadd.f32 %v2618_v48, %v2343_v50  ;;  %v2923_v48 = vld [vmem:[%s3671_s5 + $0x10] sm:$0xff]  }
  0xf5   :  { %v2620_v51 = vpop.f32.mrf.mxu0 }
  0xf6   :  { %v2621_v54 = vadd.f32 %v2620_v51, %v2619_v47  ;;  %v2642_v55 = vpop.f32.mrf.mxu1  ;;  %v668_v59 = vadd.f32 %v2640_v53, %v627_v52  ;;  %v2922_v47 = vld [vmem:[%s3671_s5 + $0x50] sm:$0xff]   ;;  %v2926_v51 = vld [vmem:[%s3671_s5 + $0x40] sm:$0xff]  }
  0xf7   :  { %v2643_v0 = vadd.f32 %v2642_v55, %v2641_v49  ;;  %v2924_v49 = vld [vmem:[%s3671_s5 + $0x48] sm:$0xff]   ;;  %v2927_v52 = vld [vmem:[%s3671_s5] sm:$0xff]   ;;  %v900_v55 = vlaneseq }
  0xf8   :  { %v630_v60 = vadd.f32 %v2621_v54, %v2343_v50  ;;  %v2925_v50 = vld [vmem:[%s3671_s5 + $0x8] sm:$0xff]   ;;  %v1229_v53 = vld [vmem:[%s3667_s1] sm:$0xff] }
  0xf9   :  { %1233 = vrot.lane.b32.xlu0 %v1229_v53, %s3038_s17  ;;  %v1230_v54 = vld [vmem:[%s3667_s1 + $0x8] sm:$0xff]  ;;  %v2939_v53 = vld [vmem:[%s3669_s3 + $0xb0] sm:$0xff]  }
  0xfa   :  { %v671_v5 = vadd.f32 %v2643_v0, %v630_v60 }
  0xfd   :  { %1235 = vrot.lane.b32.xlu0 %v1230_v54, %s3038_s17  ;;  %v2940_v54 = vld [vmem:[%s3669_s3 + $0xa8] sm:$0xff]  }
 0x10f   :  { %v2660_v56 = vpop.f32.mrf.mxu0 }
 0x110   :  { %v2682_v57 = vpop.f32.mrf.mxu1 }
 0x111   :  { %v2661_v58 = vpop.f32.mrf.mxu0 }
 0x112   :  { %v2662_v61 = vadd.f32 %v2661_v58, %v2660_v56  ;;  %v2683_v62 = vpop.f32.mrf.mxu1  ;;  %v3492_v56 = vshrl.u32 %v900_v55, 7  ;;  %v2941_v55 = vld [vmem:[%s3669_s3 + $0xa0] sm:$0xff]  }
 0x113   :  { %v2663_v63 = vpop.f32.mrf.mxu0  ;;  %v2684_v2 = vadd.f32 %v2683_v62, %v2682_v57 }
 0x114   :  { %v709_v1 = vadd.f32 %v2662_v61, %v668_v59  ;;  %v2685_v3 = vpop.f32.mrf.mxu1  ;;  %v906_v57 = vsub.s32 1, %v3492_v56  ;;  %v902_v58 = vsub.s32 0, %v3492_v56  ;;  %v898_v59 = vld [vmem:[%s3674_s8 + $0x5] sm:$0x3] }
 0x115   :  { %v2664_v4 = vpop.f32.mrf.mxu0 }
 0x116   :  { %v750_v6 = vadd.f32 %v2684_v2, %v709_v1  ;;  %v2665_v7 = vadd.f32 %v2664_v4, %v2663_v63  ;;  %v2686_v8 = vpop.f32.mrf.mxu1  ;;  %v907_v60 = vrot.slane %v898_v59, %v906_v57  ;;  %v903_v61 = vrot.slane %v898_v59, %v902_v58  ;;  %v2942_v59 = vld [vmem:[%s3669_s3 + $0x98] sm:$0xff]  }
 0x117   :  { %v2687_v10 = vadd.f32 %v2686_v8, %v2685_v3 }
 0x118   :  { %v712_v9 = vadd.f32 %v2665_v7, %v671_v5  ;;  %v758_v11 = vmul.f32 0.01, %v750_v6  ;;  %vm756_vm1 = vcmp.gt.f32.partialorder %v750_v6, 0.0 }
 0x11a   :  { %v753_v12 = vadd.f32 %v2687_v10, %v712_v9  ;;  %v760_v14 = vsel %vm756_vm1, %v750_v6, %v758_v11 }
 0x11c   :  { %vm757_vm2 = vcmp.gt.f32.partialorder %v753_v12, 0.0  ;;  %v759_v13 = vmul.f32 0.01, %v753_v12 }
 0x11e   :  { %v761_v15 = vsel %vm757_vm2, %v753_v12, %v759_v13 }
 0x11f   :  { %v778_v16 = vpack.c.bf16 %v761_v15, %v760_v14 }
 0x121   :  { %2757 = vmatmul.mubr.bf16.vlgmr.msra.gmra.mxu0 %v778_v16 }
 0x122   :  { %2698 = vmatpush3.bf16.msra.mxu0 %v2913_v26 }
 0x123   :  { %2699 = vmatprep.subr.bf16.mxu0 %v2914_v27 }
 0x126   :  { %2700 = vmatpush3.bf16.msra.mxu0 %v2915_v28 }
 0x127   :  { %2701 = vmatprep.subr.bf16.mxu0 %v2916_v29 }
 0x12a   :  { %2702 = vmatpush3.bf16.msra.mxu0 %v2917_v30 }
 0x12b   :  { %2703 = vmatprep.subr.bf16.mxu0 %v2918_v31  ;;  %v2928_v31 = vld [vmem:[%s3672_s6 + $0x8] sm:$0xff]  }
 0x12e   :  { %2704 = vmatpush3.bf16.msra.mxu0 %v2919_v32  ;;  %v2929_v32 = vld [vmem:[%s3672_s6] sm:$0xff]  }
 0x12f   :  { %2705 = vmatprep.subr.bf16.mxu0 %v2920_v33 }
 0x132   :  { %2706 = vmatpush3.bf16.msra.mxu0 %v2921_v46  ;;  %v2932_v46 = vld [vmem:[%s3669_s3 + $0x68] sm:$0xff]  }
 0x133   :  { %2707 = vmatprep.subr.bf16.mxu0 %v2922_v47  ;;  %v2933_v47 = vld [vmem:[%s3669_s3 + $0x60] sm:$0xff]  }
 0x136   :  { %2708 = vmatpush3.bf16.msra.mxu0 %v2923_v48  ;;  %v2934_v48 = vld [vmem:[%s3669_s3 + $0x58] sm:$0xff]  }
 0x137   :  { %2709 = vmatprep.subr.bf16.mxu0 %v2924_v49  ;;  %v2935_v49 = vld [vmem:[%s3669_s3 + $0x50] sm:$0xff]  }
 0x13a   :  { %2710 = vmatpush3.bf16.msra.mxu0 %v2925_v50  ;;  %v2936_v50 = vld [vmem:[%s3669_s3 + $0x48] sm:$0xff]  }
 0x13b   :  { %2711 = vmatprep.subr.bf16.mxu0 %v2926_v51  ;;  %v2937_v51 = vld [vmem:[%s3669_s3 + $0x40] sm:$0xff]  }
 0x13e   :  { %2712 = vmatpush3.bf16.msra.mxu0 %v2927_v52  ;;  %v2938_v52 = vld [vmem:[%s3669_s3 + $0xb8] sm:$0xff]  }
 0x13f   :  { %2788 = vmatprep.subr.bf16.mxu0 %v3039_v25 }
 0x16b   :  { %v1234_v33 = vpop.permute.xlu0 %1233 }
 0x1e1   :  { %v868_v35 = vpop.f32.mrf.mxu0 }
 0x1e2   :  { %v869_v36 = vadd.f32 %v2408_v34, %v868_v35 }
 0x1e3   :  { %v2758_v37 = vpop.f32.mrf.mxu0 }
 0x1e4   :  { %v877_v39 = vmul.f32 0.01, %v869_v36  ;;  %vm875_vm3 = vcmp.gt.f32.partialorder %v869_v36, 0.0 }
 0x1e5   :  { %v871_v38 = vpop.f32.mrf.mxu0 }
 0x1e6   :  { %v872_v40 = vadd.f32 %v2408_v34, %v871_v38  ;;  %v879_v43 = vsel %vm875_vm3, %v869_v36, %v877_v39  ;;  %v1236_v36 = vpop.permute.xlu0 %1235 }
 0x1e7   :  { %v2759_v41 = vpop.f32.mrf.mxu0 }
 0x1e8   :  { %vm876_vm4 = vcmp.gt.f32.partialorder %v872_v40, 0.0  ;;  %v878_v42 = vmul.f32 0.01, %v872_v40 }
 0x1ea   :  { %v880_v44 = vsel %vm876_vm4, %v872_v40, %v878_v42 }
 0x1eb   :  { %v897_v45 = vpack.c.bf16 %v880_v44, %v879_v43  ;;  %v2930_v43 = vld [vmem:[%s3669_s3 + $0x78] sm:$0xff]  }
 0x1ed   :  { %1023 = vmatmul.mubr.bf16.vlgmr.msra.gmra.mxu1 %v897_v45  ;;  %v2931_v45 = vld [vmem:[%s3669_s3 + $0x70] sm:$0xff]  }
 0x1ee   :  { %2764 = vmatprep.mubr.msk.bf16.mxu1 %vm3040_vm0, %v3039_v25  ;;  %2761 = vmatpush3.bf16.msra.mxu1 %v2928_v31  ;;  %v1602_v31 = vld [vmem:[#allocation2 + $0x120] sm:$0xff] }
 0x1ef   :  { %2762 = vmatprep.subr.bf16.mxu1 %v3039_v25 }
 0x1f2   :  { %2763 = vmatpush3.bf16.msra.mxu1 %v2929_v32 }
 0x1f3   :  { %2768 = vmatprep.subr.bf16.mxu1 %v3039_v25 }
 0x2ad   :  { %v1024_v62 = vpop.f32.mrf.mxu1 }
 0x2ae   :  { %v1025_v1 = vadd.f32 %v1024_v62, %v903_v61  ;;  %v2450_v62 = vld [vmem:[%s3674_s8 + $0x2] ss:$0 sm:$0xff] }
 0x2af   :  { %v1026_v63 = vpop.f32.mrf.mxu1 }
 0x2b0   :  { %v1027_v0 = vadd.f32 %v1026_v63, %v907_v60  ;;  %v1037_v8 = vmul.f32 0.01, %v1025_v1  ;;  %vm1033_vm7 = vcmp.gt.f32.partialorder %v1025_v1, 0.0 }
 0x2b1   :  { %v1028_v2 = vpop.f32.mrf.mxu1 }
 0x2b2   :  { %v1029_v3 = vadd.f32 %v1028_v2, %v903_v61  ;;  %v1038_v5 = vmul.f32 0.01, %v1027_v0  ;;  %vm1034_vm6 = vcmp.gt.f32.partialorder %v1027_v0, 0.0  ;;  %v1041_v13 = vsel %vm1033_vm7, %v1025_v1, %v1037_v8 }
 0x2b3   :  { %v1030_v4 = vpop.f32.mrf.mxu1 }
 0x2b4   :  { %vm1035_vm5 = vcmp.gt.f32.partialorder %v1029_v3, 0.0  ;;  %v1039_v6 = vmul.f32 0.01, %v1029_v3  ;;  %v1031_v7 = vadd.f32 %v1030_v4, %v907_v60  ;;  %v1042_v11 = vsel %vm1034_vm6, %v1027_v0, %v1038_v5 }
 0x2b6   :  { %vm1036_vm8 = vcmp.gt.f32.partialorder %v1031_v7, 0.0  ;;  %v1040_v9 = vmul.f32 0.01, %v1031_v7  ;;  %v1043_v10 = vsel %vm1035_vm5, %v1029_v3, %v1039_v6 }
 0x2b7   :  { %v1077_v15 = vpack.c.bf16 %v1043_v10, %v1041_v13  ;;  %v2943_v10 = vld [vmem:[%s3669_s3 + $0x90] sm:$0xff]   ;;  %v1622_v13 = vld [vmem:[#allocation2 + $0x1c0] sm:$0xff] }
 0x2b8   :  { %v1044_v12 = vsel %vm1036_vm8, %v1031_v7, %v1040_v9 }
 0x2b9   :  { %v1078_v14 = vpack.c.bf16 %v1044_v12, %v1042_v11  ;;  %v2944_v11 = vld [vmem:[%s3669_s3 + $0x88] sm:$0xff]   ;;  %v2945_v12 = vld [vmem:[%s3669_s3 + $0x80] sm:$0xff]  }
 0x2bb   :  { %1214 = vmatprep.mubr.bf16.mxu0 %v1078_v14  ;;  %v1626_v14 = vld [vmem:[#allocation2 + $0x1e0] sm:$0xff] }
 0x2bc   :  { %1215 = vmatmul.mubr.bf16.vlgmr.msra.gmra.mxu0 %v1077_v15  ;;  %v1623_v15 = vld [vmem:[#allocation2 + $0x1c8] sm:$0xff] }
 0x2bd   :  { %2804 = vmatprep.mubr.msk.bf16.mxu0 %vm3040_vm0, %v3039_v25  ;;  %2789 = vmatpush3.bf16.msra.mxu0 %v2938_v52  ;;  %v1619_v52 = vld [vmem:[#allocation2 + $0x1a8] sm:$0xff] }
 0x2be   :  { %2790 = vmatprep.subr.bf16.mxu0 %v3039_v25 }
 0x2c1   :  { %2791 = vmatpush3.bf16.msra.mxu0 %v2939_v53 }
 0x2c2   :  { %2792 = vmatprep.subr.bf16.mxu0 %v3039_v25 }
 0x2c5   :  { %2793 = vmatpush3.bf16.msra.mxu0 %v2940_v54 }
 0x2c6   :  { %2794 = vmatprep.subr.bf16.mxu0 %v3039_v25 }
 0x2c9   :  { %2795 = vmatpush3.bf16.msra.mxu0 %v2941_v55 }
 0x2ca   :  { %2796 = vmatprep.subr.bf16.mxu0 %v3039_v25 }
 0x2cd   :  { %2797 = vmatpush3.bf16.msra.mxu0 %v2942_v59 }
 0x2ce   :  { %2798 = vmatprep.subr.bf16.mxu0 %v3039_v25 }
 0x2d1   :  { %2799 = vmatpush3.bf16.msra.mxu0 %v2943_v10 }
 0x2d2   :  { %2800 = vmatprep.subr.bf16.mxu0 %v3039_v25 }
 0x2d5   :  { %2801 = vmatpush3.bf16.msra.mxu0 %v2944_v11 }
 0x2d6   :  { %2802 = vmatprep.subr.bf16.mxu0 %v3039_v25 }
 0x2d9   :  { %2803 = vmatpush3.bf16.msra.mxu0 %v2945_v12 }
 0x37c   :  { %v2713_v16 = vpop.f32.mrf.mxu0 }
 0x37e   :  { %v2714_v18 = vpop.f32.mrf.mxu0 }
 0x37f   :  { %v2715_v19 = vadd.f32 %v2714_v18, %v2713_v16  ;;  %v2560_v16 = vcombine.low %v1622_v13, %v1626_v14  ;;  %v1627_v18 = vld [vmem:[#allocation2 + $0x1e8] sm:$0xff] }
 0x380   :  { %v2716_v20 = vpop.f32.mrf.mxu0 }
 0x381   :  { %v1217_v21 = vadd.f32 %v2715_v19, %v2433_v17  ;;  %v1614_v19 = vld [vmem:[#allocation2 + $0x180] sm:$0xff] }
 0x382   :  { %v2717_v22 = vpop.f32.mrf.mxu0 }
 0x383   :  { %v1223_v24 = vmul.f32 0.5, %v1217_v21  ;;  %2318 = vst.msk [vmem:[%s3676_s10] sm:$0xff] %vm2317_vm9, %v1217_v21  ;;  %v2718_v26 = vadd.f32 %v2717_v22, %v2716_v20  ;;  %v1618_v20 = vld [vmem:[#allocation2 + $0x1a0] sm:$0xff]  ;;  %v2563_v22 = vcombine.high %v1623_v15, %v1627_v18 }
 0x385   :  { %v1225_v27 = vmul.f32 1.442695, %v1223_v24  ;;  %v1220_v28 = vadd.f32 %v2718_v26, %v2433_v17  ;;  %v2561_v17 = vcombine.high %v1622_v13, %v1626_v14  ;;  %v2553_v24 = vcombine.high %v1614_v19, %v1618_v20  ;;  %2036 = vmatprep.subr.bf16.mxu0 %v2563_v22  ;;  %v1606_v26 = vld [vmem:[#allocation2 + $0x140] sm:$0xff] }
 0x386   :  { %v1574_v13 = vld [vmem:[#allocation2 + $0x40] sm:$0xff] }
 0x387   :  { %2946 = vpow2.f32 %v1225_v27  ;;  %v1224_v29 = vmul.f32 0.5, %v1220_v28  ;;  %2319 = vst.msk [vmem:[%s3676_s10 + $0x8] sm:$0xff] %vm2317_vm9, %v1220_v28  ;;  %v1610_v27 = vld [vmem:[#allocation2 + $0x160] sm:$0xff] }
 0x388   :  { %v1578_v14 = vld [vmem:[#allocation2 + $0x60] sm:$0xff] }
 0x389   :  { %v1227_v30 = vmul.f32 1.442695, %v1224_v29  ;;  %v2544_v29 = vcombine.low %v1606_v26, %v1610_v27  ;;  %v1570_v22 = vld [vmem:[#allocation2 + $0x20] sm:$0xff] }
 0x38b   :  { %2948 = vpow2.f32 %v1227_v30  ;;  %v1598_v30 = vld [vmem:[#allocation2 + $0x100] sm:$0xff] }
 0x38c   :  { %v2537_v32 = vcombine.high %v1598_v30, %v1602_v31 }
 0x394   :  { %v2947_v34 = vpop.eup %2946 }
 0x395   :  { %v1239_v35 = vmul.f32 %v2947_v34, %v1234_v33  ;;  %v2536_v33 = vcombine.low %v1598_v30, %v1602_v31  ;;  %v1590_v34 = vld [vmem:[#allocation2 + $0xc0] sm:$0xff]  ;;  %v1624_v30 = vld [vmem:[#allocation2 + $0x1d0] sm:$0xff] }
 0x396   :  { %v1628_v31 = vld [vmem:[#allocation2 + $0x1f0] sm:$0xff] }
 0x397   :  { %1243 = vrot.lane.b32.xlu1 %v1239_v35, %s3042_s25  ;;  %v1594_v35 = vld [vmem:[#allocation2 + $0xe0] sm:$0xff] }
 0x398   :  { %v2949_v37 = vpop.eup %2948 }
 0x399   :  { %v1240_v38 = vmul.f32 %v2949_v37, %v1236_v36  ;;  %v2529_v36 = vcombine.high %v1590_v34, %v1594_v35  ;;  %v2528_v37 = vcombine.low %v1590_v34, %v1594_v35  ;;  %v2565_v34 = vcombine.high %v1624_v30, %v1628_v31  ;;  %v1629_v35 = vld [vmem:[#allocation2 + $0x1f8] sm:$0xff] }
 0x39b   :  { %1245 = vrot.lane.b32.xlu1 %v1240_v38, %s3042_s25  ;;  %v1582_v38 = vld [vmem:[#allocation2 + $0x80] sm:$0xff] }
 0x409   :  { %v1244_v39 = vpop.permute.xlu1 %1243 }
 0x40a   :  { %v1249_v40 = vadd.f32 %v1244_v39, %v1217_v21  ;;  %v2562_v21 = vcombine.low %v1623_v15, %v1627_v18  ;;  %v1586_v39 = vld [vmem:[#allocation2 + $0xa0] sm:$0xff]  ;;  %v1575_v15 = vld [vmem:[#allocation2 + $0x48] sm:$0xff]  ;;  %v2512_v18 = vcombine.low %v1574_v13, %v1578_v14 }
 0x40c   :  { %2322 = vrot.lane.b32.xlu0 %v1249_v40, %s3043_s26 }
 0x40d   :  { %v1246_v41 = vpop.permute.xlu1 %1245 }
 0x40e   :  { %v1250_v42 = vadd.f32 %v1246_v41, %v1220_v28  ;;  %v2545_v28 = vcombine.high %v1606_v26, %v1610_v27  ;;  %v2520_v41 = vcombine.low %v1582_v38, %v1586_v39  ;;  %v1571_v26 = vld [vmem:[#allocation2 + $0x28] sm:$0xff] }
 0x410   :  { %v1255_v44 = vpack.c.bf16 %v1250_v42, %v1249_v40  ;;  %2324 = vrot.lane.b32.xlu1 %v1250_v42, %s3043_s26  ;;  %v2521_v40 = vcombine.high %v1582_v38, %v1586_v39  ;;  %v2470_v42 = vld [vmem:[%s3674_s8 + $0x3] ss:$0 sm:$0xff]  ;;  %v2495_v38 = vld [vmem:[%s3674_s8 + $0x4] ss:$0 sm:$0xff] }
 0x412   :  { %2765 = vmatmul.mubr.msk.bf16.vlgmr.msra.gmra.mxu1 %vm1275_vm10, %v1255_v44 }
 0x413   :  { %2769 = vmatpush3.bf16.msra.mxu1 %v2930_v43  ;;  %2784 = vmatprep.mubr.msk.bf16.mxu1 %vm3040_vm0, %v3039_v25 }
 0x414   :  { %2770 = vmatprep.subr.bf16.mxu1 %v3039_v25 }
 0x417   :  { %2771 = vmatpush3.bf16.msra.mxu1 %v2931_v45 }
 0x418   :  { %2772 = vmatprep.subr.bf16.mxu1 %v3039_v25 }
 0x41b   :  { %2773 = vmatpush3.bf16.msra.mxu1 %v2932_v46 }
 0x41c   :  { %2774 = vmatprep.subr.bf16.mxu1 %v3039_v25 }
 0x41f   :  { %2775 = vmatpush3.bf16.msra.mxu1 %v2933_v47 }
 0x420   :  { %2776 = vmatprep.subr.bf16.mxu1 %v3039_v25 }
 0x423   :  { %2777 = vmatpush3.bf16.msra.mxu1 %v2934_v48 }
 0x424   :  { %2778 = vmatprep.subr.bf16.mxu1 %v3039_v25 }
 0x427   :  { %2779 = vmatpush3.bf16.msra.mxu1 %v2935_v49 }
 0x428   :  { %2780 = vmatprep.subr.bf16.mxu1 %v3039_v25 }
 0x42b   :  { %2781 = vmatpush3.bf16.msra.mxu1 %v2936_v50 }
 0x42c   :  { %2782 = vmatprep.subr.bf16.mxu1 %v3039_v25 }
 0x42f   :  { %2783 = vmatpush3.bf16.msra.mxu1 %v2937_v51  ;;  %v1615_v51 = vld [vmem:[#allocation2 + $0x188] sm:$0xff] }
 0x430   :  { %1993 = vmatprep.subr.bf16.mxu1 %v2561_v17  ;;  %v2555_v59 = vcombine.high %v1615_v51, %v1619_v52  ;;  %v1579_v17 = vld [vmem:[#allocation2 + $0x68] sm:$0xff] }
 0x47e   :  { %v2323_v60 = vpop.permute.xlu0 %2322 }
 0x47f   :  { %2329 = vst.msk [vmem:[%s3676_s10] sm:$0xff] %vm2328_vm11, %v2323_v60  ;;  %v1607_v60 = vld [vmem:[#allocation2 + $0x148] sm:$0xff] }
 0x480   :  { %2332 = vst.msk [vmem:[%s3676_s10] sm:$0xff] %vm2331_vm12, %v3039_v25 }
 0x482   :  { %v2325_v61 = vpop.permute.xlu1 %2324 }
 0x483   :  { %2330 = vst.msk [vmem:[%s3676_s10 + $0x8] sm:$0xff] %vm2328_vm11, %v2325_v61  ;;  %v1611_v61 = vld [vmem:[#allocation2 + $0x168] sm:$0xff] }
 0x484   :  { %2333 = vst.msk [vmem:[%s3676_s10 + $0x8] sm:$0xff] %vm2331_vm12, %v3039_v25  ;;  %v2552_v25 = vcombine.low %v1614_v19, %v1618_v20  ;;  %v2514_v19 = vcombine.low %v1575_v15, %v1579_v17  ;;  %v2515_v20 = vcombine.high %v1575_v15, %v1579_v17 }
 0x4d2   :  { %v1313_v63 = vpop.f32.mrf.mxu1 }
 0x4d3   :  { %v1314_v0 = vadd.f32 %v2450_v62, %v1313_v63  ;;  %v2547_v63 = vcombine.high %v1607_v60, %v1611_v61 }
 0x4d4   :  { %v2766_v1 = vpop.f32.mrf.mxu1 }
 0x4d5   :  { %v1322_v3 = vmul.f32 0.01, %v1314_v0  ;;  %vm1320_vm13 = vcmp.gt.f32.partialorder %v1314_v0, 0.0  ;;  %v1603_v1 = vld [vmem:[#allocation2 + $0x128] sm:$0xff] }
 0x4d6   :  { %v1316_v2 = vpop.f32.mrf.mxu1 }
 0x4d7   :  { %v1317_v4 = vadd.f32 %v2450_v62, %v1316_v2  ;;  %v1324_v7 = vsel %vm1320_vm13, %v1314_v0, %v1322_v3  ;;  %v2554_v62 = vcombine.low %v1615_v51, %v1619_v52  ;;  %v1599_v0 = vld [vmem:[#allocation2 + $0x108] sm:$0xff]  ;;  %v2546_v2 = vcombine.low %v1607_v60, %v1611_v61  ;;  %v1612_v60 = vld [vmem:[#allocation2 + $0x170] sm:$0xff]  ;;  %v1609_v61 = vld [vmem:[#allocation2 + $0x158] sm:$0xff] }
 0x4d8   :  { %v2767_v5 = vpop.f32.mrf.mxu1  ;;  %v2539_v3 = vcombine.high %v1599_v0, %v1603_v1 }
 0x4d9   :  { %vm1321_vm14 = vcmp.gt.f32.partialorder %v1317_v4, 0.0  ;;  %v1323_v6 = vmul.f32 0.01, %v1317_v4  ;;  %v1595_v5 = vld [vmem:[#allocation2 + $0xe8] sm:$0xff] }
 0x4db   :  { %v1325_v8 = vsel %vm1321_vm14, %v1317_v4, %v1323_v6  ;;  %v1591_v4 = vld [vmem:[#allocation2 + $0xc8] sm:$0xff]  ;;  %v2538_v6 = vcombine.low %v1599_v0, %v1603_v1 }
 0x4dc   :  { %v1343_v9 = vpack.c.bf16 %v1325_v8, %v1324_v7  ;;  %v2531_v7 = vcombine.high %v1591_v4, %v1595_v5  ;;  %v1583_v8 = vld [vmem:[#allocation2 + $0x88] sm:$0xff]  ;;  %v2530_v10 = vcombine.low %v1591_v4, %v1595_v5  ;;  %v1604_v4 = vld [vmem:[#allocation2 + $0x130] sm:$0xff]  ;;  %v1601_v5 = vld [vmem:[#allocation2 + $0x118] sm:$0xff] }
 0x4de   :  { %2785 = vmatmul.mubr.bf16.vlgmr.msra.gmra.mxu1 %v1343_v9  ;;  %v1587_v9 = vld [vmem:[#allocation2 + $0xa8] sm:$0xff] }
 0x4df   :  { %2025 = vmatprep.mubr.bf16.mxu1 %v3041_v23  ;;  %1994 = vmatpush1.bf16.msra.mxu1 %v2560_v16  ;;  %v2523_v11 = vcombine.high %v1583_v8, %v1587_v9  ;;  %v2522_v12 = vcombine.low %v1583_v8, %v1587_v9  ;;  %v2513_v16 = vcombine.high %v1574_v13, %v1578_v14  ;;  %v1593_v13 = vld [vmem:[#allocation2 + $0xd8] sm:$0xff] }
 0x4e0   :  { %1995 = vmatprep.subr.bf16.mxu1 %v2553_v24  ;;  %v1567_v24 = vld [vmem:[#allocation2 + $0x8] sm:$0xff]  ;;  %v1597_v14 = vld [vmem:[#allocation2 + $0xf8] sm:$0xff] }
 0x4e3   :  { %1996 = vmatpush1.bf16.msra.mxu1 %v2552_v25 }
 0x4e4   :  { %1997 = vmatprep.subr.bf16.mxu1 %v2545_v28  ;;  %v2506_v28 = vcombine.low %v1567_v24, %v1571_v26 }
 0x4e7   :  { %1998 = vmatpush1.bf16.msra.mxu1 %v2544_v29  ;;  %v2507_v29 = vcombine.high %v1567_v24, %v1571_v26  ;;  %v2534_v24 = vcombine.low %v1593_v13, %v1597_v14 }
 0x4e8   :  { %1999 = vmatprep.subr.bf16.mxu1 %v2537_v32  ;;  %v1625_v32 = vld [vmem:[#allocation2 + $0x1d8] sm:$0xff] }
 0x4eb   :  { %2000 = vmatpush1.bf16.msra.mxu1 %v2536_v33  ;;  %v2564_v33 = vcombine.low %v1624_v30, %v1628_v31  ;;  %v1581_v30 = vld [vmem:[#allocation2 + $0x78] sm:$0xff] }
 0x4ec   :  { %2001 = vmatprep.subr.bf16.mxu1 %v2529_v36  ;;  %v2566_v36 = vcombine.low %v1625_v32, %v1629_v35 }
 0x4ef   :  { %2002 = vmatpush1.bf16.msra.mxu1 %v2528_v37  ;;  %v2567_v37 = vcombine.high %v1625_v32, %v1629_v35  ;;  %v1568_v35 = vld [vmem:[#allocation2 + $0x10] sm:$0xff] }
 0x4f0   :  { %2003 = vmatprep.subr.bf16.mxu1 %v2521_v40 }
 0x4f3   :  { %2004 = vmatpush1.bf16.msra.mxu1 %v2520_v41 }
 0x4f4   :  { %2005 = vmatprep.subr.bf16.mxu1 %v2513_v16 }
 0x4f7   :  { %2006 = vmatpush1.bf16.msra.mxu1 %v2512_v18  ;;  %v1584_v18 = vld [vmem:[#allocation2 + $0x90] sm:$0xff] }
 0x59e   :  { %v1433_v43 = vpop.f32.mrf.mxu1 }
 0x59f   :  { %v1434_v44 = vadd.f32 %v2470_v42, %v1433_v43 }
 0x5a0   :  { %v2786_v45 = vpop.f32.mrf.mxu1 }
 0x5a1   :  { %v1442_v47 = vmul.f32 0.01, %v1434_v44  ;;  %vm1440_vm15 = vcmp.gt.f32.partialorder %v1434_v44, 0.0 }
 0x5a2   :  { %v1436_v46 = vpop.f32.mrf.mxu1 }
 0x5a3   :  { %v1437_v48 = vadd.f32 %v2470_v42, %v1436_v46  ;;  %v1444_v53 = vsel %vm1440_vm15, %v1434_v44, %v1442_v47  ;;  %v1616_v46 = vld [vmem:[#allocation2 + $0x190] sm:$0xff] }
 0x5a4   :  { %v2787_v49 = vpop.f32.mrf.mxu1 }
 0x5a5   :  { %vm1441_vm0 = vcmp.gt.f32.partialorder %v1437_v48, 0.0  ;;  %v1443_v50 = vmul.f32 0.01, %v1437_v48  ;;  %v1617_v49 = vld [vmem:[#allocation2 + $0x198] sm:$0xff] }
 0x5a7   :  { %v1445_v54 = vsel %vm1441_vm0, %v1437_v48, %v1443_v50  ;;  %v1620_v48 = vld [vmem:[#allocation2 + $0x1b0] sm:$0xff]  ;;  %v1621_v50 = vld [vmem:[#allocation2 + $0x1b8] sm:$0xff] }
 0x5a8   :  { %v1463_v55 = vpack.c.bf16 %v1445_v54, %v1444_v53  ;;  %v2557_v54 = vcombine.high %v1616_v46, %v1620_v48  ;;  %v2558_v0 = vcombine.low %v1617_v49, %v1621_v50 }
 0x5aa   :  { %2805 = vmatmul.mubr.bf16.vlgmr.msra.gmra.mxu0 %v1463_v55  ;;  %v2559_v55 = vcombine.high %v1617_v49, %v1621_v50 }
 0x5ab   :  { %2037 = vmatpush1.bf16.msra.mxu0 %v2562_v21  ;;  %2068 = vmatprep.mubr.bf16.mxu0 %v3041_v23  ;;  %v1566_v21 = vld [vmem:[#allocation2] sm:$0xff] }
 0x5ac   :  { %2038 = vmatprep.subr.bf16.mxu0 %v2555_v59  ;;  %v2505_v25 = vcombine.high %v1566_v21, %v1570_v22  ;;  %v2504_v27 = vcombine.low %v1566_v21, %v1570_v22  ;;  %v1608_v59 = vld [vmem:[#allocation2 + $0x150] sm:$0xff]  ;;  %v1589_v21 = vld [vmem:[#allocation2 + $0xb8] sm:$0xff] }
 0x5ad   :  { %v2549_v1 = vcombine.high %v1608_v59, %v1612_v60 }
 0x5ae   :  { %2007 = vmatprep.subr.bf16.mxu1 %v2505_v25 }
 0x5af   :  { %2039 = vmatpush1.bf16.msra.mxu0 %v2554_v62  ;;  %2008 = vmatpush1.bf16.msra.mxu1 %v2504_v27  ;;  %v1613_v62 = vld [vmem:[#allocation2 + $0x178] sm:$0xff]  ;;  %v1576_v27 = vld [vmem:[#allocation2 + $0x50] sm:$0xff] }
 0x5b0   :  { %2040 = vmatprep.subr.bf16.mxu0 %v2547_v63  ;;  %2079 = vmatprep.subr.bf16.mxu1 %v2565_v34  ;;  %v2556_v63 = vcombine.low %v1616_v46, %v1620_v48  ;;  %v2550_v8 = vcombine.low %v1609_v61, %v1613_v62  ;;  %v3623_v46 = vld [vmem:[%s3674_s8 + $0x7] sm:$0xff] }
 0x5b1   :  { %v1636_v48 = vrot.slane %v3623_v46, %v902_v58  ;;  %v1640_v50 = vrot.slane %v3623_v46, %v906_v57 }
 0x5b3   :  { %2041 = vmatpush1.bf16.msra.mxu0 %v2546_v2  ;;  %v2551_v2 = vcombine.high %v1609_v61, %v1613_v62 }
 0x5b4   :  { %2042 = vmatprep.subr.bf16.mxu0 %v2539_v3  ;;  %v1600_v3 = vld [vmem:[#allocation2 + $0x110] sm:$0xff] }
 0x5b5   :  { %v2541_v9 = vcombine.high %v1600_v3, %v1604_v4  ;;  %v2540_v15 = vcombine.low %v1600_v3, %v1604_v4 }
 0x5b7   :  { %2043 = vmatpush1.bf16.msra.mxu0 %v2538_v6  ;;  %v1605_v6 = vld [vmem:[#allocation2 + $0x138] sm:$0xff] }
 0x5b8   :  { %2044 = vmatprep.subr.bf16.mxu0 %v2531_v7  ;;  %v2548_v7 = vcombine.low %v1608_v59, %v1612_v60  ;;  %v2542_v16 = vcombine.low %v1601_v5, %v1605_v6 }
 0x5bb   :  { %2045 = vmatpush1.bf16.msra.mxu0 %v2530_v10  ;;  %v2543_v10 = vcombine.high %v1601_v5, %v1605_v6 }
 0x5bc   :  { %2046 = vmatprep.subr.bf16.mxu0 %v2523_v11  ;;  %v1592_v11 = vld [vmem:[#allocation2 + $0xd0] sm:$0xff] }
 0x5bf   :  { %2047 = vmatpush1.bf16.msra.mxu0 %v2522_v12  ;;  %v1596_v12 = vld [vmem:[#allocation2 + $0xf0] sm:$0xff] }
 0x5c0   :  { %2048 = vmatprep.subr.bf16.mxu0 %v2515_v20  ;;  %v2533_v17 = vcombine.high %v1592_v11, %v1596_v12  ;;  %v1585_v20 = vld [vmem:[#allocation2 + $0x98] sm:$0xff]  ;;  %v2532_v22 = vcombine.low %v1592_v11, %v1596_v12 }
 0x5c1   :  { %v2527_v26 = vcombine.high %v1585_v20, %v1589_v21  ;;  %v2526_v32 = vcombine.low %v1585_v20, %v1589_v21 }
 0x5c3   :  { %2049 = vmatpush1.bf16.msra.mxu0 %v2514_v19  ;;  %v1588_v19 = vld [vmem:[#allocation2 + $0xb0] sm:$0xff] }
 0x5c4   :  { %2050 = vmatprep.subr.bf16.mxu0 %v2507_v29  ;;  %v2525_v25 = vcombine.high %v1584_v18, %v1588_v19  ;;  %v1577_v29 = vld [vmem:[#allocation2 + $0x58] sm:$0xff]  ;;  %v2524_v31 = vcombine.low %v1584_v18, %v1588_v19 }
 0x5c5   :  { %v2519_v34 = vcombine.high %v1577_v29, %v1581_v30 }
 0x5c7   :  { %2051 = vmatpush1.bf16.msra.mxu0 %v2506_v28  ;;  %v1580_v28 = vld [vmem:[#allocation2 + $0x70] sm:$0xff] }
 0x5c8   :  { %2122 = vmatprep.subr.bf16.mxu0 %v2567_v37  ;;  %v1569_v37 = vld [vmem:[#allocation2 + $0x18] sm:$0xff] }
 0x66a   :  { %v1553_v39 = vpop.f32.mrf.mxu0 }
 0x66b   :  { %v1554_v40 = vadd.f32 %v2495_v38, %v1553_v39  ;;  %v2516_v39 = vcombine.low %v1576_v27, %v1580_v28 }
 0x66c   :  { %v2806_v41 = vpop.f32.mrf.mxu0 }
 0x66d   :  { %v1562_v43 = vmul.f32 0.01, %v1554_v40  ;;  %vm1560_vm1 = vcmp.gt.f32.partialorder %v1554_v40, 0.0 }
 0x66e   :  { %v1556_v42 = vpop.f32.mrf.mxu0 }
 0x66f   :  { %v1557_v44 = vadd.f32 %v2495_v38, %v1556_v42  ;;  %v1564_v51 = vsel %vm1560_vm1, %v1554_v40, %v1562_v43  ;;  %v1573_v38 = vld [vmem:[#allocation2 + $0x38] sm:$0xff]  ;;  %v2518_v40 = vcombine.low %v1577_v29, %v1581_v30  ;;  %v1659_v29 = vsub.s32 6, %v3492_v56 }
 0x670   :  { %v2807_v45 = vpop.f32.mrf.mxu0  ;;  %v2511_v42 = vcombine.high %v1569_v37, %v1573_v38 }
 0x671   :  { %vm1561_vm2 = vcmp.gt.f32.partialorder %v1557_v44, 0.0  ;;  %v1563_v47 = vmul.f32 0.01, %v1557_v44  ;;  %v1643_v45 = vsub.s32 2, %v3492_v56 }
 0x673   :  { %v1565_v52 = vsel %vm1561_vm2, %v1557_v44, %v1563_v47  ;;  %v2510_v44 = vcombine.low %v1569_v37, %v1573_v38  ;;  %v1647_v47 = vsub.s32 3, %v3492_v56  ;;  %v1644_v49 = vrot.slane %v3623_v46, %v1643_v45 }
 0x674   :  { %v3611_v53 = vpack.c.bf16 %v1565_v52, %v1564_v51 }
 0x675   :  { %v1648_v51 = vrot.slane %v3623_v46, %v1647_v47 }
 0x676   :  { %2026 = vmatmul.mubr.bf16.vlgmr.msra.gmra.mxu1 %v3611_v53  ;;  %2069 = vmatmul.mubr.bf16.vlgmr.msra.gmra.mxu0 %v3611_v53 }
 0x677   :  { %2080 = vmatpush1.bf16.msra.mxu1 %v2564_v33  ;;  %2123 = vmatpush1.bf16.msra.mxu0 %v2566_v36  ;;  %v2517_v33 = vcombine.high %v1576_v27, %v1580_v28  ;;  %v1572_v36 = vld [vmem:[#allocation2 + $0x30] sm:$0xff]  ;;  %v1651_v28 = vsub.s32 4, %v3492_v56 }
 0x678   :  { %2081 = vmatprep.subr.bf16.mxu1 %v2557_v54  ;;  %2124 = vmatprep.subr.bf16.mxu0 %v2559_v55  ;;  %v2509_v41 = vcombine.high %v1568_v35, %v1572_v36  ;;  %v2508_v43 = vcombine.low %v1568_v35, %v1572_v36 }
 0x679   :  { %2111 = vmatprep.mubr.bf16.mxu1 %v3041_v23  ;;  %2154 = vmatprep.mubr.bf16.mxu0 %v3041_v23  ;;  %v2535_v23 = vcombine.high %v1593_v13, %v1597_v14 }
 0x67b   :  { %2082 = vmatpush1.bf16.msra.mxu1 %v2556_v63  ;;  %2125 = vmatpush1.bf16.msra.mxu0 %v2558_v0 }
 0x67c   :  { %2083 = vmatprep.subr.bf16.mxu1 %v2549_v1  ;;  %2126 = vmatprep.subr.bf16.mxu0 %v2551_v2 }
 0x67f   :  { %2084 = vmatpush1.bf16.msra.mxu1 %v2548_v7  ;;  %2127 = vmatpush1.bf16.msra.mxu0 %v2550_v8 }
 0x680   :  { %2085 = vmatprep.subr.bf16.mxu1 %v2541_v9  ;;  %2128 = vmatprep.subr.bf16.mxu0 %v2543_v10 }
 0x683   :  { %2086 = vmatpush1.bf16.msra.mxu1 %v2540_v15  ;;  %2129 = vmatpush1.bf16.msra.mxu0 %v2542_v16 }
 0x684   :  { %2087 = vmatprep.subr.bf16.mxu1 %v2533_v17  ;;  %2130 = vmatprep.subr.bf16.mxu0 %v2535_v23 }
 0x687   :  { %2088 = vmatpush1.bf16.msra.mxu1 %v2532_v22  ;;  %2131 = vmatpush1.bf16.msra.mxu0 %v2534_v24 }
 0x688   :  { %2089 = vmatprep.subr.bf16.mxu1 %v2525_v25  ;;  %2132 = vmatprep.subr.bf16.mxu0 %v2527_v26 }
 0x68b   :  { %2090 = vmatpush1.bf16.msra.mxu1 %v2524_v31  ;;  %2133 = vmatpush1.bf16.msra.mxu0 %v2526_v32  ;;  %v1655_v31 = vsub.s32 5, %v3492_v56  ;;  %v1663_v32 = vsub.s32 7, %v3492_v56 }
 0x68c   :  { %2091 = vmatprep.subr.bf16.mxu1 %v2517_v33  ;;  %2134 = vmatprep.subr.bf16.mxu0 %v2519_v34  ;;  %v1652_v33 = vrot.slane %v3623_v46, %v1651_v28  ;;  %v1660_v34 = vrot.slane %v3623_v46, %v1659_v29 }
 0x68d   :  { %v1656_v35 = vrot.slane %v3623_v46, %v1655_v31  ;;  %v1664_v36 = vrot.slane %v3623_v46, %v1663_v32 }
 0x68f   :  { %2092 = vmatpush1.bf16.msra.mxu1 %v2516_v39  ;;  %2135 = vmatpush1.bf16.msra.mxu0 %v2518_v40 }
 0x690   :  { %2093 = vmatprep.subr.bf16.mxu1 %v2509_v41  ;;  %2136 = vmatprep.subr.bf16.mxu0 %v2511_v42 }
 0x693   :  { %2094 = vmatpush1.bf16.msra.mxu1 %v2508_v43  ;;  %2137 = vmatpush1.bf16.msra.mxu0 %v2510_v44 }
 0x696   :  { %2112 = vmatmul.mubr.bf16.vlgmr.msra.gmra.mxu1 %v3611_v53  ;;  %2155 = vmatmul.mubr.bf16.vlgmr.msra.gmra.mxu0 %v3611_v53 }
 0x736   :  { %v2027_v52 = vpop.f32.mrf.mxu1  ;;  %v2070_v53 = vpop.f32.mrf.mxu0 }
 0x737   :  { %v2028_v54 = vadd.f32 %v2027_v52, %v1636_v48  ;;  %v2071_v55 = vadd.f32 %v2070_v53, %v1644_v49 }
 0x738   :  { %v2029_v59 = vpop.f32.mrf.mxu1  ;;  %v2072_v60 = vpop.f32.mrf.mxu0 }
 0x739   :  { %v2568_v61 = vmul.f32 -1.442695, %v2028_v54  ;;  %v2570_v62 = vmul.f32 -1.442695, %v2071_v55  ;;  %v2030_v63 = vadd.f32 %v2029_v59, %v1640_v50  ;;  %v2073_v0 = vadd.f32 %v2072_v60, %v1648_v51 }
 0x73a   :  { %v2031_v1 = vpop.f32.mrf.mxu1  ;;  %v2074_v58 = vpop.f32.mrf.mxu0 }
 0x73b   :  { %2950 = vpow2.f32 %v2568_v61  ;;  %v2569_v2 = vmul.f32 -1.442695, %v2030_v63  ;;  %v2571_v3 = vmul.f32 -1.442695, %v2073_v0  ;;  %v2032_v4 = vadd.f32 %v2031_v1, %v1636_v48 }
 0x73c   :  { %2952 = vpow2.f32 %v2570_v62  ;;  %v2075_v57 = vadd.f32 %v2074_v58, %v1644_v49  ;;  %v2033_v5 = vpop.f32.mrf.mxu1  ;;  %v2076_v6 = vpop.f32.mrf.mxu0 }
 0x73d   :  { %2954 = vpow2.f32 %v2569_v2  ;;  %v2576_v7 = vmul.f32 -1.442695, %v2032_v4  ;;  %v2034_v8 = vadd.f32 %v2033_v5, %v1640_v50  ;;  %v2077_v9 = vadd.f32 %v2076_v6, %v1648_v51 }
 0x73e   :  { %2956 = vpow2.f32 %v2571_v3  ;;  %v2578_v10 = vmul.f32 -1.442695, %v2075_v57 }
 0x73f   :  { %2958 = vpow2.f32 %v2576_v7  ;;  %v2577_v11 = vmul.f32 -1.442695, %v2034_v8  ;;  %v2579_v12 = vmul.f32 -1.442695, %v2077_v9 }
 0x740   :  { %2960 = vpow2.f32 %v2578_v10 }
 0x741   :  { %2962 = vpow2.f32 %v2577_v11 }
 0x742   :  { %2964 = vpow2.f32 %v2579_v12 }
 0x748   :  { %v2951_v13 = vpop.eup %2950 }
 0x749   :  { %v2953_v14 = vpop.eup %2952  ;;  %v2213_v15 = vadd.f32 1.0, %v2951_v13 }
 0x74a   :  { %v2955_v16 = vpop.eup %2954  ;;  %v2215_v17 = vadd.f32 1.0, %v2953_v14 }
 0x74b   :  { %v2957_v23 = vpop.eup %2956  ;;  %2966 = vrcp.f32 %v2213_v15  ;;  %v2214_v18 = vadd.f32 1.0, %v2955_v16 }
 0x74c   :  { %v2959_v19 = vpop.eup %2958  ;;  %2968 = vrcp.f32 %v2215_v17  ;;  %v2216_v20 = vadd.f32 1.0, %v2957_v23 }
 0x74d   :  { %v2961_v21 = vpop.eup %2960  ;;  %2970 = vrcp.f32 %v2214_v18  ;;  %v2221_v22 = vadd.f32 1.0, %v2959_v19 }
 0x74e   :  { %v2963_v24 = vpop.eup %2962  ;;  %2972 = vrcp.f32 %v2216_v20  ;;  %v2223_v25 = vadd.f32 1.0, %v2961_v21 }
 0x74f   :  { %v2965_v26 = vpop.eup %2964  ;;  %2974 = vrcp.f32 %v2221_v22  ;;  %v2222_v27 = vadd.f32 1.0, %v2963_v24 }
 0x750   :  { %2976 = vrcp.f32 %v2223_v25  ;;  %v2224_v30 = vadd.f32 1.0, %v2965_v26 }
 0x751   :  { %2978 = vrcp.f32 %v2222_v27 }
 0x752   :  { %2980 = vrcp.f32 %v2224_v30 }
 0x756   :  { %v2113_v37 = vpop.f32.mrf.mxu1  ;;  %v2156_v38 = vpop.f32.mrf.mxu0 }
 0x757   :  { %v2114_v39 = vadd.f32 %v2113_v37, %v1652_v33  ;;  %v2157_v40 = vadd.f32 %v2156_v38, %v1660_v34 }
 0x758   :  { %v2967_v41 = vpop.eup %2966  ;;  %v2115_v42 = vpop.f32.mrf.mxu1 }
 0x759   :  { %v2158_v43 = vpop.f32.mrf.mxu0  ;;  %v2969_v44 = vpop.eup %2968  ;;  %v2572_v45 = vmul.f32 -1.442695, %v2114_v39  ;;  %v2574_v47 = vmul.f32 -1.442695, %v2157_v40  ;;  %v2116_v56 = vadd.f32 %v2115_v42, %v1656_v35 }
 0x75a   :  { %v2159_v48 = vadd.f32 %v2158_v43, %v1664_v36  ;;  %v2971_v49 = vpop.eup %2970  ;;  %v2117_v50 = vpop.f32.mrf.mxu1 }
 0x75b   :  { %v2160_v51 = vpop.f32.mrf.mxu0  ;;  %v2973_v52 = vpop.eup %2972  ;;  %v2592_v53 = vpack.c.bf16 %v2971_v49, %v2967_v41  ;;  %2982 = vpow2.f32 %v2572_v45  ;;  %v2573_v54 = vmul.f32 -1.442695, %v2116_v56  ;;  %v2118_v60 = vadd.f32 %v2117_v50, %v1652_v33 }
 0x75c   :  { %v2575_v46 = vmul.f32 -1.442695, %v2159_v48  ;;  %v2975_v55 = vpop.eup %2974  ;;  %v2593_v59 = vpack.c.bf16 %v2973_v52, %v2969_v44  ;;  %2984 = vpow2.f32 %v2574_v47  ;;  %v2161_v61 = vadd.f32 %v2160_v51, %v1660_v34  ;;  %v2119_v62 = vpop.f32.mrf.mxu1 }
 0x75d   :  { %v2162_v63 = vpop.f32.mrf.mxu0  ;;  %v2977_v0 = vpop.eup %2976  ;;  %2309 = vst [vmem:[%s3675_s9] sm:$0xff] %v2592_v53  ;;  %2986 = vpow2.f32 %v2573_v54  ;;  %v2120_v1 = vadd.f32 %v2119_v62, %v1656_v35  ;;  %v2580_v3 = vmul.f32 -1.442695, %v2118_v60 }
 0x75e   :  { %v2163_v58 = vadd.f32 %v2162_v63, %v1664_v36  ;;  %v2979_v2 = vpop.eup %2978  ;;  %2310 = vst [vmem:[%s3675_s9 + $0x8] sm:$0xff] %v2593_v59  ;;  %2988 = vpow2.f32 %v2575_v46  ;;  %v2582_v4 = vmul.f32 -1.442695, %v2161_v61 }
 0x75f   :  { %v2981_v57 = vpop.eup %2980  ;;  %v2596_v5 = vpack.c.bf16 %v2979_v2, %v2975_v55  ;;  %v2581_v6 = vmul.f32 -1.442695, %v2120_v1  ;;  %2990 = vpow2.f32 %v2580_v3 }
 0x760   :  { %v2583_v7 = vmul.f32 -1.442695, %v2163_v58  ;;  %v2597_v8 = vpack.c.bf16 %v2981_v57, %v2977_v0  ;;  %2992 = vpow2.f32 %v2582_v4 }
 0x761   :  { %2313 = vst [vmem:[%s3675_s9 + $0x20] sm:$0xff] %v2596_v5  ;;  %2994 = vpow2.f32 %v2581_v6 }
 0x762   :  { %2314 = vst [vmem:[%s3675_s9 + $0x28] sm:$0xff] %v2597_v8  ;;  %2996 = vpow2.f32 %v2583_v7 }
 0x768   :  { %v2983_v9 = vpop.eup %2982 }
 0x769   :  { %v2985_v10 = vpop.eup %2984  ;;  %v2217_v11 = vadd.f32 1.0, %v2983_v9 }
 0x76a   :  { %v2987_v12 = vpop.eup %2986  ;;  %v2219_v13 = vadd.f32 1.0, %v2985_v10 }
 0x76b   :  { %v2989_v14 = vpop.eup %2988  ;;  %2998 = vrcp.f32 %v2217_v11  ;;  %v2218_v15 = vadd.f32 1.0, %v2987_v12 }
 0x76c   :  { %3000 = vrcp.f32 %v2219_v13  ;;  %v2220_v16 = vadd.f32 1.0, %v2989_v14  ;;  %v2991_v17 = vpop.eup %2990 }
 0x76d   :  { %3002 = vrcp.f32 %v2218_v15  ;;  %v2993_v23 = vpop.eup %2992  ;;  %v2225_v18 = vadd.f32 1.0, %v2991_v17 }
 0x76e   :  { %3004 = vrcp.f32 %v2220_v16  ;;  %v2995_v19 = vpop.eup %2994  ;;  %v2227_v20 = vadd.f32 1.0, %v2993_v23 }
 0x76f   :  { %v2997_v21 = vpop.eup %2996  ;;  %3006 = vrcp.f32 %v2225_v18  ;;  %v2226_v22 = vadd.f32 1.0, %v2995_v19 }
 0x770   :  { %3008 = vrcp.f32 %v2227_v20  ;;  %v2228_v24 = vadd.f32 1.0, %v2997_v21 }
 0x771   :  { %3010 = vrcp.f32 %v2226_v22 }
 0x772   :  { %3012 = vrcp.f32 %v2228_v24 }
 0x778   :  { %v2999_v25 = vpop.eup %2998 }
 0x779   :  { %v3001_v26 = vpop.eup %3000 }
 0x77a   :  { %v3003_v27 = vpop.eup %3002 }
 0x77b   :  { %v3005_v28 = vpop.eup %3004  ;;  %v2594_v29 = vpack.c.bf16 %v3003_v27, %v2999_v25 }
 0x77c   :  { %v2595_v30 = vpack.c.bf16 %v3005_v28, %v3001_v26  ;;  %v3007_v31 = vpop.eup %3006 }
 0x77d   :  { %2311 = vst [vmem:[%s3675_s9 + $0x10] sm:$0xff] %v2594_v29  ;;  %v3009_v32 = vpop.eup %3008 }
 0x77e   :  { %2312 = vst [vmem:[%s3675_s9 + $0x18] sm:$0xff] %v2595_v30  ;;  %v3011_v33 = vpop.eup %3010 }
 0x77f   :  { %v3013_v34 = vpop.eup %3012  ;;  %v2598_v35 = vpack.c.bf16 %v3011_v33, %v3007_v31 }
 0x780   :  { %v2599_v36 = vpack.c.bf16 %v3013_v34, %v3009_v32 }
 0x781   :  { %2315 = vst [vmem:[%s3675_s9 + $0x30] sm:$0xff] %v2598_v35 }
 0x782   :  { %2316 = vst [vmem:[%s3675_s9 + $0x38] sm:$0xff] %v2599_v36 }
 0x783   :  { %2342 = vsyncpa [#allocation3], 1 }

</bundles_post_ra>
